<compile_context>
chip_gen: v7x
topology: tpu7x:2x2x1
jax: 0.10.0
libtpu: 0.0.40
codegen_flags: <defaults>
</compile_context>

<pallas_src>
import functools
import math

import jax
import jax.numpy as jnp
from jax.experimental import pallas as pl
from jax.experimental.pallas import tpu as pltpu

LN_EPS = 1e-5
# Large finite negative instead of -inf: exp(s - max) stays NaN-free.
NEG_BIAS = -1e30

# Single-buffer grid-invariant operands (weights / biases / LN params).
SINGLE_BUFFER_WEIGHTS = True


def _vmem_capacity_bytes():
    try:
        return int(pltpu.get_tpu_info().vmem_capacity_bytes)
    except Exception:
        return 128 * 1024 * 1024  # v5e/v6e default


_VMEM_CAP = _vmem_capacity_bytes()
# ~96 MiB scoped request on v5e/v6e (128 MiB physical), ~48 MiB on v7x (64 MiB).
VMEM_LIMIT_BYTES = min(100 * 1024 * 1024, int(0.75 * _VMEM_CAP))


def _pick_tq(S):
    """Query-row tile: whole sequence if small, else chip-dependent."""
    if S <= 128:
        return S
    # v5e/v6e (128 MiB VMEM): big tiles amortize grid-step overhead and stream
    # more LHS rows per resident weight tile.  v7x (64 MiB VMEM): tq=128 keeps
    # the working set under physical VMEM and exposes more (b, s) tiles for its
    # two TensorCores.
    prefs = (256, 128) if _VMEM_CAP >= 96 * 1024 * 1024 else (128, 256)
    for t in prefs:
        if S % t == 0:
            return t
    # TODO(synk): pad ragged S to a multiple of 128 instead of a full-S tile
    # (full-S f32 logits can blow VMEM for large ragged S).
    return S


def _layernorm(x, g, b):
    mu = jnp.mean(x, axis=-1, keepdims=True)
    var = jnp.mean((x - mu) ** 2, axis=-1, keepdims=True)
    return (x - mu) * jax.lax.rsqrt(var + LN_EPS) * g + b


def _gelu_new(x):
    c = 0.7978845608028654  # sqrt(2/pi)
    return 0.5 * x * (1.0 + jnp.tanh(c * (x + 0.044715 * x * x * x)))


def _const(shape):
    """BlockSpec for a grid-invariant operand (constant index_map)."""
    idx = lambda b, s: (0,) * len(shape)
    if SINGLE_BUFFER_WEIGHTS and hasattr(pl, "Buffered"):
        try:
            return pl.BlockSpec(shape, idx, pipeline_mode=pl.Buffered(1))
        except Exception:
            pass
    return pl.BlockSpec(shape, idx)


# --------------------------------------------------------------------------
# Kernel A: LayerNorm1 + fused QKV projection, emitted head-major
#           (Q [nH,tq,hd], K^T [nH,hd,tq], V [nH,tq,hd]).
# --------------------------------------------------------------------------
def ln_qkv_kernel(h_ref, ln1g_ref, ln1b_ref, w_ref, b_ref,
                  q_ref, kT_ref, v_ref, *, n_head):
    x = _layernorm(h_ref[0].astype(jnp.float32), ln1g_ref[0], ln1b_ref[0])
    # single fused [H,3H] MXU matmul; bf16 LHS / f32 accumulate
    qkv = jnp.dot(x.astype(jnp.bfloat16), w_ref[...],
                  preferred_element_type=jnp.float32) + b_ref[0]
    H = x.shape[-1]
    hd = H // n_head
    for hh in range(n_head):
        q_ref[0, hh] = qkv[:, hh * hd:(hh + 1) * hd].astype(jnp.bfloat16)
        # Pre-transpose K once per row tile (amortized over all q tiles in B).
        kT_ref[0, hh] = (qkv[:, H + hh * hd:H + (hh + 1) * hd].T
                         ).astype(jnp.bfloat16)
        v_ref[0, hh] = qkv[:, 2 * H + hh * hd:2 * H + (hh + 1) * hd
                           ].astype(jnp.bfloat16)


# --------------------------------------------------------------------------
# Kernel B: attention (causal + additive adjacency) + out-proj + residual
#           + LayerNorm2 + MLP(gelu_new) + residual [+ optional ln_f].
# --------------------------------------------------------------------------
def attn_mlp_kernel(h_ref, q_ref, kT_ref, v_ref, adj_ref,
                    wproj_ref, bproj_ref, ln2g_ref, ln2b_ref,
                    wfc_ref, bfc_ref, wfc2_ref, bfc2_ref,
                    lnfg_ref, lnfb_ref,
                    o_ref, acc_ref, *, n_head, final_ln):
    h = h_ref[0].astype(jnp.float32)            # [tq, H] residual stream
    tq, H = h.shape
    hd = H // n_head
    S = kT_ref.shape[-1]

    # Combined causal + additive adjacency bias, once per tile, reused by all
    # heads.  Adjacency already clamped >= NEG_BIAS on the host.
    q0 = pl.program_id(1) * tq
    row = q0 + jax.lax.broadcasted_iota(jnp.int32, (tq, S), 0)
    col = jax.lax.broadcasted_iota(jnp.int32, (tq, S), 1)
    bias = jnp.where(col <= row, adj_ref[...].astype(jnp.float32), NEG_BIAS)

    # Per-head attention.  Q already carries 1/sqrt(hd) (folded into W_q/b_q);
    # K arrives pre-transposed, so both matmuls feed the MXU directly.
    for hh in range(n_head):
        q_h = q_ref[0, hh]                       # [tq, hd] bf16
        kT_h = kT_ref[0, hh]                     # [hd, S]  bf16
        v_h = v_ref[0, hh]                       # [S, hd]  bf16
        s = jnp.dot(q_h, kT_h, preferred_element_type=jnp.float32) + bias
        s = s - jnp.max(s, axis=-1, keepdims=True)
        p = jnp.exp(s)
        # divide -> EUP reciprocal (separate VLIW slot)
        p = p * pl.reciprocal(jnp.sum(p, axis=-1, keepdims=True), approx=True)
        # write this head's context straight into the VMEM accumulator (keeps
        # vreg pressure bounded; no end-of-loop concat)
        acc_ref[:, hh * hd:(hh + 1) * hd] = jnp.dot(
            p.astype(jnp.bfloat16), v_h, preferred_element_type=jnp.float32)

    attn = jnp.dot(acc_ref[...].astype(jnp.bfloat16), wproj_ref[...],
                   preferred_element_type=jnp.float32) + bproj_ref[0]
    h = h + attn

    x2 = _layernorm(h, ln2g_ref[0], ln2b_ref[0])
    f = jnp.dot(x2.astype(jnp.bfloat16), wfc_ref[...],
                preferred_element_type=jnp.float32) + bfc_ref[0]
    f = _gelu_new(f)
    f = jnp.dot(f.astype(jnp.bfloat16), wfc2_ref[...],
                preferred_element_type=jnp.float32) + bfc2_ref[0]
    h = h + f
    if final_ln:                                 # fused ln_f epilogue
        h = _layernorm(h, lnfg_ref[0], lnfb_ref[0])
    o_ref[0] = h.astype(o_ref.dtype)


def gpt2_block(h, adjacency, lp, n_head, tq, lnf_g, lnf_b, final_ln):
    """One transformer block.  h: [B, S, H] bf16, adjacency: [S, S] bf16."""
    B, S, H = h.shape
    assert S % tq == 0
    nSt = S // tq
    hd = H // n_head
    (ln1g, ln1b, wqkv, bqkv, wproj, bproj, ln2g, ln2b, wfc, bfc, wfc2, bfc2) = lp

    cparams = pltpu.CompilerParams(
        dimension_semantics=("parallel", "parallel"),
        vmem_limit_bytes=VMEM_LIMIT_BYTES)

    row_spec = pl.BlockSpec((1, tq, H), lambda b, s: (b, s, 0))

    # ---- Kernel A: ln1 + fused QKV projection (head-major outputs) ----
    q_hm, kT, v_hm = pl.pallas_call(
        functools.partial(ln_qkv_kernel, n_head=n_head),
        out_shape=(jax.ShapeDtypeStruct((B, n_head, S, hd), jnp.bfloat16),
                   jax.ShapeDtypeStruct((B, n_head, hd, S), jnp.bfloat16),
                   jax.ShapeDtypeStruct((B, n_head, S, hd), jnp.bfloat16)),
        grid=(B, nSt),
        in_specs=[row_spec,
                  _const((1, H)), _const((1, H)),
                  _const((H, 3 * H)), _const((1, 3 * H))],
        out_specs=(pl.BlockSpec((1, n_head, tq, hd), lambda b, s: (b, 0, s, 0)),
                   pl.BlockSpec((1, n_head, hd, tq), lambda b, s: (b, 0, 0, s)),
                   pl.BlockSpec((1, n_head, tq, hd), lambda b, s: (b, 0, s, 0))),
        compiler_params=cparams,
    )(h, ln1g, ln1b, wqkv, bqkv)

    # ---- Kernel B: attention + proj + residual + ln2 + MLP + residual ----
    out_dtype = jnp.float32 if final_ln else jnp.bfloat16
    h_next = pl.pallas_call(
        functools.partial(attn_mlp_kernel, n_head=n_head, final_ln=final_ln),
        out_shape=jax.ShapeDtypeStruct((B, S, H), out_dtype),
        grid=(B, nSt),
        in_specs=[row_spec,                                                  # residual
                  pl.BlockSpec((1, n_head, tq, hd), lambda b, s: (b, 0, s, 0)),  # Q tile
                  pl.BlockSpec((1, n_head, hd, S), lambda b, s: (b, 0, 0, 0)),   # K^T (full seq)
                  pl.BlockSpec((1, n_head, S, hd), lambda b, s: (b, 0, 0, 0)),   # V   (full seq)
                  pl.BlockSpec((tq, S), lambda b, s: (s, 0)),                    # adjacency rows
                  _const((H, H)), _const((1, H)),                                # c_proj
                  _const((1, H)), _const((1, H)),                                # ln_2
                  _const((H, 4 * H)), _const((1, 4 * H)),                        # c_fc
                  _const((4 * H, H)), _const((1, H)),                            # mlp c_proj
                  _const((1, H)), _const((1, H))],                               # ln_f
        out_specs=pl.BlockSpec((1, tq, H), lambda b, s: (b, s, 0)),
        scratch_shapes=[pltpu.VMEM((tq, H), jnp.float32)],
        compiler_params=cparams,
    )(h, q_hm, kT, v_hm, adjacency, wproj, bproj, ln2g, ln2b,
      wfc, bfc, wfc2, bfc2, lnf_g, lnf_b)
    return h_next


# --------------------------------------------------------------------------
# Parameters (synthetic GPT-2 style; LoRA delta + attention scale folded in).
# --------------------------------------------------------------------------
def init_params(key, n_layer, H, n_head, max_pos, lora_rank=16, lora_alpha=32):
    ks = jax.random.split(key, 1 + 6 * n_layer)
    std = 0.02
    idx = 0

    def nrm(shape, scale=std):
        nonlocal idx
        k = ks[idx]; idx += 1
        return (scale * jax.random.normal(k, shape)).astype(jnp.float32)

    wpe = nrm((max_pos, H))
    scaling = lora_alpha / lora_rank
    hd = H // n_head
    qscale = 1.0 / math.sqrt(hd)
    layers = []
    for _ in range(n_layer):
        w_attn = nrm((H, 3 * H))
        lora_A = nrm((lora_rank, H))              # [r, in]
        lora_B = nrm((3 * H, lora_rank), 0.01)    # [out, r] (nonzero, synthetic)
        w_attn = w_attn + scaling * (lora_A.T @ lora_B.T)     # fold LoRA into c_attn
        b_attn = jnp.zeros((1, 3 * H), jnp.float32)
        # Fold the 1/sqrt(hd) attention scale into the q projection (perf).
        w_attn = w_attn.at[:, :H].multiply(qscale)
        b_attn = b_attn.at[:, :H].multiply(qscale)
        layer = (
            jnp.ones((1, H), jnp.float32), jnp.zeros((1, H), jnp.float32),        # ln_1
            w_attn.astype(jnp.bfloat16), b_attn,                                  # c_attn (fused)
            nrm((H, H)).astype(jnp.bfloat16), jnp.zeros((1, H), jnp.float32),     # c_proj
            jnp.ones((1, H), jnp.float32), jnp.zeros((1, H), jnp.float32),        # ln_2
            nrm((H, 4 * H)).astype(jnp.bfloat16), jnp.zeros((1, 4 * H), jnp.float32),  # c_fc
            nrm((4 * H, H)).astype(jnp.bfloat16), jnp.zeros((1, H), jnp.float32), # mlp c_proj
        )
        layers.append(layer)
    return {"wpe": wpe, "layers": layers,
            "lnf_g": jnp.ones((1, H), jnp.float32),
            "lnf_b": jnp.zeros((1, H), jnp.float32)}


# --------------------------------------------------------------------------
# Forward pass mirroring PFA.forward (dropout p=0, inputs_embeds given).
# --------------------------------------------------------------------------
def pfa_forward(x, adjacency_matrix, params, n_head):
    """x: [B, S, H], adjacency_matrix: [S, S] (same mask for every batch/head,
    so it is NOT expanded to [B, nH, S, S]; it is added inside the kernel)."""
    B, S, H = x.shape
    # Clamp so -inf adjacency values cannot NaN a fully-masked row; ship bf16.
    adj = jnp.maximum(adjacency_matrix.astype(jnp.float32), NEG_BIAS
                      ).astype(jnp.bfloat16)
    # Residual stream carried in bf16 between kernels / across layers
    # (LayerNorm / softmax / gelu all computed in f32 inside the kernels).
    h = (x + params["wpe"][:S][None, :, :]).astype(jnp.bfloat16)
    tq = _pick_tq(S)
    n_layer = len(params["layers"])
    for i, lp in enumerate(params["layers"]):
        h = gpt2_block(h, adj, lp, n_head, tq,
                       params["lnf_g"], params["lnf_b"],
                       final_ln=(i == n_layer - 1))
    # ln_f fused into the last layer's kernel B; .view(...) and Dropout(p=0)
    # are identities.
    return h


if __name__ == "__main__":
    B, S, H = 2, 8, 32
    n_head, n_layer, max_pos = 4, 3, 32          # synthetic small GPT-2 config
    # TODO(synk): real PFA uses pretrained GPT-2 (H=768, nH=12, 6 layers) + PEFT
    # LoRA wrapping; weights here are synthesized deterministically instead.
    # Profile/tune only at the real config — at H=32/S=8 every op is masked and
    # perf conclusions do not extrapolate.

    key = jax.random.PRNGKey(0)
    kx, kadj, kp = jax.random.split(key, 3)
    x = jax.random.normal(kx, (B, S, H), dtype=jnp.float32)
    adjacency = jax.random.bernoulli(kadj, 0.5, (S, S)).astype(jnp.float32)

    params = init_params(kp, n_layer, H, n_head, max_pos)

    try:
        out = jax.block_until_ready(pfa_forward(x, adjacency, params, n_head))
    except Exception:
        # Fallback for jax versions where pipeline_mode=pl.Buffered(1) is not
        # accepted: retry with default double-buffered weight BlockSpecs.
        SINGLE_BUFFER_WEIGHTS = False
        out = jax.block_until_ready(pfa_forward(x, adjacency, params, n_head))

    assert out.shape == (B, S, H) and bool(jnp.all(jnp.isfinite(out)))
    print("KERNEL_OK")
</pallas_src>

<mosaic_0001>
module attributes {stable_mosaic.version = 11 : i64} {
  func.func @ln_qkv_kernel(%arg0: i32, %arg1: i32, %arg2: memref<1x8x32xbf16, #tpu.memory_space<vmem>>, %arg3: memref<1x32xf32, #tpu.memory_space<vmem>>, %arg4: memref<1x32xf32, #tpu.memory_space<vmem>>, %arg5: memref<32x96xbf16, #tpu.memory_space<vmem>>, %arg6: memref<1x96xf32, #tpu.memory_space<vmem>>, %arg7: memref<1x4x8x8xbf16, #tpu.memory_space<vmem>>, %arg8: memref<1x4x8x8xbf16, #tpu.memory_space<vmem>>, %arg9: memref<1x4x8x8xbf16, #tpu.memory_space<vmem>>) attributes {dimension_semantics = [#tpu.dimension_semantics<parallel>, #tpu.dimension_semantics<parallel>], iteration_bounds = array<i64: 2, 1>, scalar_prefetch = 0 : i64, scratch_operands = 0 : i64, tpu.core_type = #tpu.core_type<tc>, window_params = [{transform_indices = @transform_0, window_bounds = array<i64: 1, 8, 32>}, {pipeline_mode = #tpu.pipeline_mode<synchronous>, transform_indices = @transform_1, window_bounds = array<i64: 1, 32>}, {pipeline_mode = #tpu.pipeline_mode<synchronous>, transform_indices = @transform_2, window_bounds = array<i64: 1, 32>}, {pipeline_mode = #tpu.pipeline_mode<synchronous>, transform_indices = @transform_3, window_bounds = array<i64: 32, 96>}, {pipeline_mode = #tpu.pipeline_mode<synchronous>, transform_indices = @transform_4, window_bounds = array<i64: 1, 96>}, {transform_indices = @transform_5, window_bounds = array<i64: 1, 4, 8, 8>}, {transform_indices = @transform_6, window_bounds = array<i64: 1, 4, 8, 8>}, {transform_indices = @transform_7, window_bounds = array<i64: 1, 4, 8, 8>}]} {
    %c0 = arith.constant 0 : index
    %c0_0 = arith.constant 0 : index
    %c0_1 = arith.constant 0 : index
    %0 = vector.load %arg2[%c0, %c0_0, %c0_1] : memref<1x8x32xbf16, #tpu.memory_space<vmem>>, vector<1x8x32xbf16>
    %1 = vector.shape_cast %0 : vector<1x8x32xbf16> to vector<8x32xbf16>
    %2 = arith.extf %1 : vector<8x32xbf16> to vector<8x32xf32>
    %c0_2 = arith.constant 0 : index
    %c0_3 = arith.constant 0 : index
    %3 = vector.load %arg3[%c0_2, %c0_3] : memref<1x32xf32, #tpu.memory_space<vmem>>, vector<1x32xf32>
    %4 = vector.shape_cast %3 : vector<1x32xf32> to vector<32xf32>
    %c0_4 = arith.constant 0 : index
    %c0_5 = arith.constant 0 : index
    %5 = vector.load %arg4[%c0_4, %c0_5] : memref<1x32xf32, #tpu.memory_space<vmem>>, vector<1x32xf32>
    %6 = vector.shape_cast %5 : vector<1x32xf32> to vector<32xf32>
    %cst = arith.constant dense<0.000000e+00> : vector<8xf32>
    %7 = vector.multi_reduction <add>, %2, %cst [1] : vector<8x32xf32> to vector<8xf32>
    %8 = vector.shape_cast %7 : vector<8xf32> to vector<8x1xf32>
    %cst_6 = arith.constant 3.200000e+01 : f32
    %9 = vector.broadcast %cst_6 : f32 to vector<8x1xf32>
    %10 = arith.divf %8, %9 : vector<8x1xf32>
    %11 = vector.broadcast %10 : vector<8x1xf32> to vector<8x32xf32>
    %12 = arith.subf %2, %11 : vector<8x32xf32>
    %13 = arith.mulf %12, %12 : vector<8x32xf32>
    %cst_7 = arith.constant dense<0.000000e+00> : vector<8xf32>
    %14 = vector.multi_reduction <add>, %13, %cst_7 [1] : vector<8x32xf32> to vector<8xf32>
    %15 = vector.shape_cast %14 : vector<8xf32> to vector<8x1xf32>
    %cst_8 = arith.constant 3.200000e+01 : f32
    %16 = vector.broadcast %cst_8 : f32 to vector<8x1xf32>
    %17 = arith.divf %15, %16 : vector<8x1xf32>
    %18 = vector.broadcast %10 : vector<8x1xf32> to vector<8x32xf32>
    %19 = arith.subf %2, %18 : vector<8x32xf32>
    %cst_9 = arith.constant 9.99999974E-6 : f32
    %20 = vector.broadcast %cst_9 : f32 to vector<8x1xf32>
    %21 = arith.addf %17, %20 : vector<8x1xf32>
    %22 = math.rsqrt %21 : vector<8x1xf32>
    %23 = vector.broadcast %22 : vector<8x1xf32> to vector<8x32xf32>
    %24 = arith.mulf %19, %23 : vector<8x32xf32>
    %25 = vector.shape_cast %4 : vector<32xf32> to vector<1x32xf32>
    %26 = vector.broadcast %25 : vector<1x32xf32> to vector<8x32xf32>
    %27 = arith.mulf %24, %26 : vector<8x32xf32>
    %28 = vector.shape_cast %6 : vector<32xf32> to vector<1x32xf32>
    %29 = vector.broadcast %28 : vector<1x32xf32> to vector<8x32xf32>
    %30 = arith.addf %27, %29 : vector<8x32xf32>
    %31 = arith.truncf %30 : vector<8x32xf32> to vector<8x32xbf16>
    %c0_10 = arith.constant 0 : index
    %c0_11 = arith.constant 0 : index
    %32 = vector.load %arg5[%c0_10, %c0_11] : memref<32x96xbf16, #tpu.memory_space<vmem>>, vector<32x96xbf16>
    %cst_12 = arith.constant dense<0.000000e+00> : vector<8x96xf32>
    %33 = tpu.matmul %31, %32, %cst_12 {dimension_numbers = #tpu.dot_dimension_numbers<[1], [0], [0], [1], [0, 0, 1, 1], [], []>} : vector<8x32xbf16>, vector<32x96xbf16>, vector<8x96xf32> -> vector<8x96xf32>
    %c0_13 = arith.constant 0 : index
    %c0_14 = arith.constant 0 : index
    %34 = vector.load %arg6[%c0_13, %c0_14] : memref<1x96xf32, #tpu.memory_space<vmem>>, vector<1x96xf32>
    %35 = vector.shape_cast %34 : vector<1x96xf32> to vector<96xf32>
    %36 = vector.shape_cast %35 : vector<96xf32> to vector<1x96xf32>
    %37 = vector.broadcast %36 : vector<1x96xf32> to vector<8x96xf32>
    %38 = arith.addf %33, %37 : vector<8x96xf32>
    %39 = vector.extract_strided_slice %38 {offsets = [0, 0], sizes = [8, 8], strides = [1, 1]} : vector<8x96xf32> to vector<8x8xf32>
    %40 = arith.truncf %39 : vector<8x8xf32> to vector<8x8xbf16>
    %c0_15 = arith.constant 0 : index
    %c0_16 = arith.constant 0 : index
    %c0_17 = arith.constant 0 : index
    %c0_18 = arith.constant 0 : index
    %41 = vector.load %arg7[%c0_15, %c0_16, %c0_17, %c0_18] : memref<1x4x8x8xbf16, #tpu.memory_space<vmem>>, vector<1x1x8x8xbf16>
    %42 = vector.shape_cast %41 : vector<1x1x8x8xbf16> to vector<8x8xbf16>
    %43 = vector.shape_cast %40 : vector<8x8xbf16> to vector<1x1x8x8xbf16>
    tpu.vector_store %arg7[%c0_15, %c0_16, %c0_17, %c0_18], %43 {strides = array<i32>} : memref<1x4x8x8xbf16, #tpu.memory_space<vmem>>, vector<1x1x8x8xbf16>,
    %44 = vector.extract_strided_slice %38 {offsets = [0, 32], sizes = [8, 8], strides = [1, 1]} : vector<8x96xf32> to vector<8x8xf32>
    %45 = tpu.transpose %44, [1, 0] : vector<8x8xf32> -> vector<8x8xf32>
    %46 = arith.truncf %45 : vector<8x8xf32> to vector<8x8xbf16>
    %c0_19 = arith.constant 0 : index
    %c0_20 = arith.constant 0 : index
    %c0_21 = arith.constant 0 : index
    %c0_22 = arith.constant 0 : index
    %47 = vector.load %arg8[%c0_19, %c0_20, %c0_21, %c0_22] : memref<1x4x8x8xbf16, #tpu.memory_space<vmem>>, vector<1x1x8x8xbf16>
    %48 = vector.shape_cast %47 : vector<1x1x8x8xbf16> to vector<8x8xbf16>
    %49 = vector.shape_cast %46 : vector<8x8xbf16> to vector<1x1x8x8xbf16>
    tpu.vector_store %arg8[%c0_19, %c0_20, %c0_21, %c0_22], %49 {strides = array<i32>} : memref<1x4x8x8xbf16, #tpu.memory_space<vmem>>, vector<1x1x8x8xbf16>,
    %50 = vector.extract_strided_slice %38 {offsets = [0, 64], sizes = [8, 8], strides = [1, 1]} : vector<8x96xf32> to vector<8x8xf32>
    %51 = arith.truncf %50 : vector<8x8xf32> to vector<8x8xbf16>
    %c0_23 = arith.constant 0 : index
    %c0_24 = arith.constant 0 : index
    %c0_25 = arith.constant 0 : index
    %c0_26 = arith.constant 0 : index
    %52 = vector.load %arg9[%c0_23, %c0_24, %c0_25, %c0_26] : memref<1x4x8x8xbf16, #tpu.memory_space<vmem>>, vector<1x1x8x8xbf16>
    %53 = vector.shape_cast %52 : vector<1x1x8x8xbf16> to vector<8x8xbf16>
    %54 = vector.shape_cast %51 : vector<8x8xbf16> to vector<1x1x8x8xbf16>
    tpu.vector_store %arg9[%c0_23, %c0_24, %c0_25, %c0_26], %54 {strides = array<i32>} : memref<1x4x8x8xbf16, #tpu.memory_space<vmem>>, vector<1x1x8x8xbf16>,
    %55 = vector.extract_strided_slice %38 {offsets = [0, 8], sizes = [8, 8], strides = [1, 1]} : vector<8x96xf32> to vector<8x8xf32>
    %56 = arith.truncf %55 : vector<8x8xf32> to vector<8x8xbf16>
    %c0_27 = arith.constant 0 : index
    %c1 = arith.constant 1 : index
    %c0_28 = arith.constant 0 : index
    %c0_29 = arith.constant 0 : index
    %57 = vector.load %arg7[%c0_27, %c1, %c0_28, %c0_29] : memref<1x4x8x8xbf16, #tpu.memory_space<vmem>>, vector<1x1x8x8xbf16>
    %58 = vector.shape_cast %57 : vector<1x1x8x8xbf16> to vector<8x8xbf16>
    %59 = vector.shape_cast %56 : vector<8x8xbf16> to vector<1x1x8x8xbf16>
    tpu.vector_store %arg7[%c0_27, %c1, %c0_28, %c0_29], %59 {strides = array<i32>} : memref<1x4x8x8xbf16, #tpu.memory_space<vmem>>, vector<1x1x8x8xbf16>,
    %60 = vector.extract_strided_slice %38 {offsets = [0, 40], sizes = [8, 8], strides = [1, 1]} : vector<8x96xf32> to vector<8x8xf32>
    %61 = tpu.transpose %60, [1, 0] : vector<8x8xf32> -> vector<8x8xf32>
    %62 = arith.truncf %61 : vector<8x8xf32> to vector<8x8xbf16>
    %c0_30 = arith.constant 0 : index
    %c1_31 = arith.constant 1 : index
    %c0_32 = arith.constant 0 : index
    %c0_33 = arith.constant 0 : index
    %63 = vector.load %arg8[%c0_30, %c1_31, %c0_32, %c0_33] : memref<1x4x8x8xbf16, #tpu.memory_space<vmem>>, vector<1x1x8x8xbf16>
    %64 = vector.shape_cast %63 : vector<1x1x8x8xbf16> to vector<8x8xbf16>
    %65 = vector.shape_cast %62 : vector<8x8xbf16> to vector<1x1x8x8xbf16>
    tpu.vector_store %arg8[%c0_30, %c1_31, %c0_32, %c0_33], %65 {strides = array<i32>} : memref<1x4x8x8xbf16, #tpu.memory_space<vmem>>, vector<1x1x8x8xbf16>,
    %66 = vector.extract_strided_slice %38 {offsets = [0, 72], sizes = [8, 8], strides = [1, 1]} : vector<8x96xf32> to vector<8x8xf32>
    %67 = arith.truncf %66 : vector<8x8xf32> to vector<8x8xbf16>
    %c0_34 = arith.constant 0 : index
    %c1_35 = arith.constant 1 : index
    %c0_36 = arith.constant 0 : index
    %c0_37 = arith.constant 0 : index
    %68 = vector.load %arg9[%c0_34, %c1_35, %c0_36, %c0_37] : memref<1x4x8x8xbf16, #tpu.memory_space<vmem>>, vector<1x1x8x8xbf16>
    %69 = vector.shape_cast %68 : vector<1x1x8x8xbf16> to vector<8x8xbf16>
    %70 = vector.shape_cast %67 : vector<8x8xbf16> to vector<1x1x8x8xbf16>
    tpu.vector_store %arg9[%c0_34, %c1_35, %c0_36, %c0_37], %70 {strides = array<i32>} : memref<1x4x8x8xbf16, #tpu.memory_space<vmem>>, vector<1x1x8x8xbf16>,
    %71 = vector.extract_strided_slice %38 {offsets = [0, 16], sizes = [8, 8], strides = [1, 1]} : vector<8x96xf32> to vector<8x8xf32>
    %72 = arith.truncf %71 : vector<8x8xf32> to vector<8x8xbf16>
    %c0_38 = arith.constant 0 : index
    %c2 = arith.constant 2 : index
    %c0_39 = arith.constant 0 : index
    %c0_40 = arith.constant 0 : index
    %73 = vector.load %arg7[%c0_38, %c2, %c0_39, %c0_40] : memref<1x4x8x8xbf16, #tpu.memory_space<vmem>>, vector<1x1x8x8xbf16>
    %74 = vector.shape_cast %73 : vector<1x1x8x8xbf16> to vector<8x8xbf16>
    %75 = vector.shape_cast %72 : vector<8x8xbf16> to vector<1x1x8x8xbf16>
    tpu.vector_store %arg7[%c0_38, %c2, %c0_39, %c0_40], %75 {strides = array<i32>} : memref<1x4x8x8xbf16, #tpu.memory_space<vmem>>, vector<1x1x8x8xbf16>,
    %76 = vector.extract_strided_slice %38 {offsets = [0, 48], sizes = [8, 8], strides = [1, 1]} : vector<8x96xf32> to vector<8x8xf32>
    %77 = tpu.transpose %76, [1, 0] : vector<8x8xf32> -> vector<8x8xf32>
    %78 = arith.truncf %77 : vector<8x8xf32> to vector<8x8xbf16>
    %c0_41 = arith.constant 0 : index
    %c2_42 = arith.constant 2 : index
    %c0_43 = arith.constant 0 : index
    %c0_44 = arith.constant 0 : index
    %79 = vector.load %arg8[%c0_41, %c2_42, %c0_43, %c0_44] : memref<1x4x8x8xbf16, #tpu.memory_space<vmem>>, vector<1x1x8x8xbf16>
    %80 = vector.shape_cast %79 : vector<1x1x8x8xbf16> to vector<8x8xbf16>
    %81 = vector.shape_cast %78 : vector<8x8xbf16> to vector<1x1x8x8xbf16>
    tpu.vector_store %arg8[%c0_41, %c2_42, %c0_43, %c0_44], %81 {strides = array<i32>} : memref<1x4x8x8xbf16, #tpu.memory_space<vmem>>, vector<1x1x8x8xbf16>,
    %82 = vector.extract_strided_slice %38 {offsets = [0, 80], sizes = [8, 8], strides = [1, 1]} : vector<8x96xf32> to vector<8x8xf32>
    %83 = arith.truncf %82 : vector<8x8xf32> to vector<8x8xbf16>
    %c0_45 = arith.constant 0 : index
    %c2_46 = arith.constant 2 : index
    %c0_47 = arith.constant 0 : index
    %c0_48 = arith.constant 0 : index
    %84 = vector.load %arg9[%c0_45, %c2_46, %c0_47, %c0_48] : memref<1x4x8x8xbf16, #tpu.memory_space<vmem>>, vector<1x1x8x8xbf16>
    %85 = vector.shape_cast %84 : vector<1x1x8x8xbf16> to vector<8x8xbf16>
    %86 = vector.shape_cast %83 : vector<8x8xbf16> to vector<1x1x8x8xbf16>
    tpu.vector_store %arg9[%c0_45, %c2_46, %c0_47, %c0_48], %86 {strides = array<i32>} : memref<1x4x8x8xbf16, #tpu.memory_space<vmem>>, vector<1x1x8x8xbf16>,
    %87 = vector.extract_strided_slice %38 {offsets = [0, 24], sizes = [8, 8], strides = [1, 1]} : vector<8x96xf32> to vector<8x8xf32>
    %88 = arith.truncf %87 : vector<8x8xf32> to vector<8x8xbf16>
    %c0_49 = arith.constant 0 : index
    %c3 = arith.constant 3 : index
    %c0_50 = arith.constant 0 : index
    %c0_51 = arith.constant 0 : index
    %89 = vector.load %arg7[%c0_49, %c3, %c0_50, %c0_51] : memref<1x4x8x8xbf16, #tpu.memory_space<vmem>>, vector<1x1x8x8xbf16>
    %90 = vector.shape_cast %89 : vector<1x1x8x8xbf16> to vector<8x8xbf16>
    %91 = vector.shape_cast %88 : vector<8x8xbf16> to vector<1x1x8x8xbf16>
    tpu.vector_store %arg7[%c0_49, %c3, %c0_50, %c0_51], %91 {strides = array<i32>} : memref<1x4x8x8xbf16, #tpu.memory_space<vmem>>, vector<1x1x8x8xbf16>,
    %92 = vector.extract_strided_slice %38 {offsets = [0, 56], sizes = [8, 8], strides = [1, 1]} : vector<8x96xf32> to vector<8x8xf32>
    %93 = tpu.transpose %92, [1, 0] : vector<8x8xf32> -> vector<8x8xf32>
    %94 = arith.truncf %93 : vector<8x8xf32> to vector<8x8xbf16>
    %c0_52 = arith.constant 0 : index
    %c3_53 = arith.constant 3 : index
    %c0_54 = arith.constant 0 : index
    %c0_55 = arith.constant 0 : index
    %95 = vector.load %arg8[%c0_52, %c3_53, %c0_54, %c0_55] : memref<1x4x8x8xbf16, #tpu.memory_space<vmem>>, vector<1x1x8x8xbf16>
    %96 = vector.shape_cast %95 : vector<1x1x8x8xbf16> to vector<8x8xbf16>
    %97 = vector.shape_cast %94 : vector<8x8xbf16> to vector<1x1x8x8xbf16>
    tpu.vector_store %arg8[%c0_52, %c3_53, %c0_54, %c0_55], %97 {strides = array<i32>} : memref<1x4x8x8xbf16, #tpu.memory_space<vmem>>, vector<1x1x8x8xbf16>,
    %98 = vector.extract_strided_slice %38 {offsets = [0, 88], sizes = [8, 8], strides = [1, 1]} : vector<8x96xf32> to vector<8x8xf32>
    %99 = arith.truncf %98 : vector<8x8xf32> to vector<8x8xbf16>
    %c0_56 = arith.constant 0 : index
    %c3_57 = arith.constant 3 : index
    %c0_58 = arith.constant 0 : index
    %c0_59 = arith.constant 0 : index
    %100 = vector.load %arg9[%c0_56, %c3_57, %c0_58, %c0_59] : memref<1x4x8x8xbf16, #tpu.memory_space<vmem>>, vector<1x1x8x8xbf16>
    %101 = vector.shape_cast %100 : vector<1x1x8x8xbf16> to vector<8x8xbf16>
    %102 = vector.shape_cast %99 : vector<8x8xbf16> to vector<1x1x8x8xbf16>
    tpu.vector_store %arg9[%c0_56, %c3_57, %c0_58, %c0_59], %102 {strides = array<i32>} : memref<1x4x8x8xbf16, #tpu.memory_space<vmem>>, vector<1x1x8x8xbf16>,
    return
  }
  func.func @transform_0(%arg0: i32, %arg1: i32) -> (i32, i32, i32) {
    %c0_i32 = arith.constant 0 : i32
    %c0_i32_0 = arith.constant 0 : i32
    return %arg0, %arg1, %c0_i32 : i32, i32, i32
  }
  func.func @transform_1(%arg0: i32, %arg1: i32) -> (i32, i32) {
    %c0_i32 = arith.constant 0 : i32
    %c0_i32_0 = arith.constant 0 : i32
    %c0_i32_1 = arith.constant 0 : i32
    return %c0_i32, %c0_i32_0 : i32, i32
  }
  func.func @transform_2(%arg0: i32, %arg1: i32) -> (i32, i32) {
    %c0_i32 = arith.constant 0 : i32
    %c0_i32_0 = arith.constant 0 : i32
    %c0_i32_1 = arith.constant 0 : i32
    return %c0_i32, %c0_i32_0 : i32, i32
  }
  func.func @transform_3(%arg0: i32, %arg1: i32) -> (i32, i32) {
    %c0_i32 = arith.constant 0 : i32
    %c0_i32_0 = arith.constant 0 : i32
    %c0_i32_1 = arith.constant 0 : i32
    return %c0_i32, %c0_i32_0 : i32, i32
  }
  func.func @transform_4(%arg0: i32, %arg1: i32) -> (i32, i32) {
    %c0_i32 = arith.constant 0 : i32
    %c0_i32_0 = arith.constant 0 : i32
    %c0_i32_1 = arith.constant 0 : i32
    return %c0_i32, %c0_i32_0 : i32, i32
  }
  func.func @transform_5(%arg0: i32, %arg1: i32) -> (i32, i32, i32, i32) {
    %c0_i32 = arith.constant 0 : i32
    %c0_i32_0 = arith.constant 0 : i32
    %c0_i32_1 = arith.constant 0 : i32
    return %arg0, %c0_i32, %arg1, %c0_i32_0 : i32, i32, i32, i32
  }
  func.func @transform_6(%arg0: i32, %arg1: i32) -> (i32, i32, i32, i32) {
    %c0_i32 = arith.constant 0 : i32
    %c0_i32_0 = arith.constant 0 : i32
    %c0_i32_1 = arith.constant 0 : i32
    return %arg0, %c0_i32, %c0_i32_0, %arg1 : i32, i32, i32, i32
  }
  func.func @transform_7(%arg0: i32, %arg1: i32) -> (i32, i32, i32, i32) {
    %c0_i32 = arith.constant 0 : i32
    %c0_i32_0 = arith.constant 0 : i32
    %c0_i32_1 = arith.constant 0 : i32
    return %arg0, %c0_i32, %arg1, %c0_i32_0 : i32, i32, i32, i32
  }
}

module attributes {stable_mosaic.version = 11 : i64} {
  func.func @ln_qkv_kernel(%arg0: i32, %arg1: i32, %arg2: memref<1x8x32xbf16, #tpu.memory_space<vmem>>, %arg3: memref<1x32xf32, #tpu.memory_space<vmem>>, %arg4: memref<1x32xf32, #tpu.memory_space<vmem>>, %arg5: memref<32x96xbf16, #tpu.memory_space<vmem>>, %arg6: memref<1x96xf32, #tpu.memory_space<vmem>>, %arg7: memref<1x4x8x8xbf16, #tpu.memory_space<vmem>>, %arg8: memref<1x4x8x8xbf16, #tpu.memory_space<vmem>>, %arg9: memref<1x4x8x8xbf16, #tpu.memory_space<vmem>>) attributes {dimension_semantics = [#tpu.dimension_semantics<parallel>, #tpu.dimension_semantics<parallel>], iteration_bounds = array<i64: 2, 1>, scalar_prefetch = 0 : i64, scratch_operands = 0 : i64, tpu.core_type = #tpu.core_type<tc>, window_params = [{transform_indices = @transform_0, window_bounds = array<i64: 1, 8, 32>}, {pipeline_mode = #tpu.pipeline_mode<synchronous>, transform_indices = @transform_1, window_bounds = array<i64: 1, 32>}, {pipeline_mode = #tpu.pipeline_mode<synchronous>, transform_indices = @transform_2, window_bounds = array<i64: 1, 32>}, {pipeline_mode = #tpu.pipeline_mode<synchronous>, transform_indices = @transform_3, window_bounds = array<i64: 32, 96>}, {pipeline_mode = #tpu.pipeline_mode<synchronous>, transform_indices = @transform_4, window_bounds = array<i64: 1, 96>}, {transform_indices = @transform_5, window_bounds = array<i64: 1, 4, 8, 8>}, {transform_indices = @transform_6, window_bounds = array<i64: 1, 4, 8, 8>}, {transform_indices = @transform_7, window_bounds = array<i64: 1, 4, 8, 8>}]} {
    %c0 = arith.constant 0 : index
    %c0_0 = arith.constant 0 : index
    %c0_1 = arith.constant 0 : index
    %0 = vector.load %arg2[%c0, %c0_0, %c0_1] : memref<1x8x32xbf16, #tpu.memory_space<vmem>>, vector<1x8x32xbf16>
    %1 = vector.shape_cast %0 : vector<1x8x32xbf16> to vector<8x32xbf16>
    %2 = arith.extf %1 : vector<8x32xbf16> to vector<8x32xf32>
    %c0_2 = arith.constant 0 : index
    %c0_3 = arith.constant 0 : index
    %3 = vector.load %arg3[%c0_2, %c0_3] : memref<1x32xf32, #tpu.memory_space<vmem>>, vector<1x32xf32>
    %4 = vector.shape_cast %3 : vector<1x32xf32> to vector<32xf32>
    %c0_4 = arith.constant 0 : index
    %c0_5 = arith.constant 0 : index
    %5 = vector.load %arg4[%c0_4, %c0_5] : memref<1x32xf32, #tpu.memory_space<vmem>>, vector<1x32xf32>
    %6 = vector.shape_cast %5 : vector<1x32xf32> to vector<32xf32>
    %cst = arith.constant dense<0.000000e+00> : vector<8xf32>
    %7 = vector.multi_reduction <add>, %2, %cst [1] : vector<8x32xf32> to vector<8xf32>
    %8 = vector.shape_cast %7 : vector<8xf32> to vector<8x1xf32>
    %cst_6 = arith.constant 3.200000e+01 : f32
    %9 = vector.broadcast %cst_6 : f32 to vector<8x1xf32>
    %10 = arith.divf %8, %9 : vector<8x1xf32>
    %11 = vector.broadcast %10 : vector<8x1xf32> to vector<8x32xf32>
    %12 = arith.subf %2, %11 : vector<8x32xf32>
    %13 = arith.mulf %12, %12 : vector<8x32xf32>
    %cst_7 = arith.constant dense<0.000000e+00> : vector<8xf32>
    %14 = vector.multi_reduction <add>, %13, %cst_7 [1] : vector<8x32xf32> to vector<8xf32>
    %15 = vector.shape_cast %14 : vector<8xf32> to vector<8x1xf32>
    %cst_8 = arith.constant 3.200000e+01 : f32
    %16 = vector.broadcast %cst_8 : f32 to vector<8x1xf32>
    %17 = arith.divf %15, %16 : vector<8x1xf32>
    %18 = vector.broadcast %10 : vector<8x1xf32> to vector<8x32xf32>
    %19 = arith.subf %2, %18 : vector<8x32xf32>
    %cst_9 = arith.constant 9.99999974E-6 : f32
    %20 = vector.broadcast %cst_9 : f32 to vector<8x1xf32>
    %21 = arith.addf %17, %20 : vector<8x1xf32>
    %22 = math.rsqrt %21 : vector<8x1xf32>
    %23 = vector.broadcast %22 : vector<8x1xf32> to vector<8x32xf32>
    %24 = arith.mulf %19, %23 : vector<8x32xf32>
    %25 = vector.shape_cast %4 : vector<32xf32> to vector<1x32xf32>
    %26 = vector.broadcast %25 : vector<1x32xf32> to vector<8x32xf32>
    %27 = arith.mulf %24, %26 : vector<8x32xf32>
    %28 = vector.shape_cast %6 : vector<32xf32> to vector<1x32xf32>
    %29 = vector.broadcast %28 : vector<1x32xf32> to vector<8x32xf32>
    %30 = arith.addf %27, %29 : vector<8x32xf32>
    %31 = arith.truncf %30 : vector<8x32xf32> to vector<8x32xbf16>
    %c0_10 = arith.constant 0 : index
    %c0_11 = arith.constant 0 : index
    %32 = vector.load %arg5[%c0_10, %c0_11] : memref<32x96xbf16, #tpu.memory_space<vmem>>, vector<32x96xbf16>
    %cst_12 = arith.constant dense<0.000000e+00> : vector<8x96xf32>
    %33 = tpu.matmul %31, %32, %cst_12 {dimension_numbers = #tpu.dot_dimension_numbers<[1], [0], [0], [1], [0, 0, 1, 1], [], []>} : vector<8x32xbf16>, vector<32x96xbf16>, vector<8x96xf32> -> vector<8x96xf32>
    %c0_13 = arith.constant 0 : index
    %c0_14 = arith.constant 0 : index
    %34 = vector.load %arg6[%c0_13, %c0_14] : memref<1x96xf32, #tpu.memory_space<vmem>>, vector<1x96xf32>
    %35 = vector.shape_cast %34 : vector<1x96xf32> to vector<96xf32>
    %36 = vector.shape_cast %35 : vector<96xf32> to vector<1x96xf32>
    %37 = vector.broadcast %36 : vector<1x96xf32> to vector<8x96xf32>
    %38 = arith.addf %33, %37 : vector<8x96xf32>
    %39 = vector.extract_strided_slice %38 {offsets = [0, 0], sizes = [8, 8], strides = [1, 1]} : vector<8x96xf32> to vector<8x8xf32>
    %40 = arith.truncf %39 : vector<8x8xf32> to vector<8x8xbf16>
    %c0_15 = arith.constant 0 : index
    %c0_16 = arith.constant 0 : index
    %c0_17 = arith.constant 0 : index
    %c0_18 = arith.constant 0 : index
    %41 = vector.load %arg7[%c0_15, %c0_16, %c0_17, %c0_18] : memref<1x4x8x8xbf16, #tpu.memory_space<vmem>>, vector<1x1x8x8xbf16>
    %42 = vector.shape_cast %41 : vector<1x1x8x8xbf16> to vector<8x8xbf16>
    %43 = vector.shape_cast %40 : vector<8x8xbf16> to vector<1x1x8x8xbf16>
    tpu.vector_store %arg7[%c0_15, %c0_16, %c0_17, %c0_18], %43 {strides = array<i32>} : memref<1x4x8x8xbf16, #tpu.memory_space<vmem>>, vector<1x1x8x8xbf16>,
    %44 = vector.extract_strided_slice %38 {offsets = [0, 32], sizes = [8, 8], strides = [1, 1]} : vector<8x96xf32> to vector<8x8xf32>
    %45 = tpu.transpose %44, [1, 0] : vector<8x8xf32> -> vector<8x8xf32>
    %46 = arith.truncf %45 : vector<8x8xf32> to vector<8x8xbf16>
    %c0_19 = arith.constant 0 : index
    %c0_20 = arith.constant 0 : index
    %c0_21 = arith.constant 0 : index
    %c0_22 = arith.constant 0 : index
    %47 = vector.load %arg8[%c0_19, %c0_20, %c0_21, %c0_22] : memref<1x4x8x8xbf16, #tpu.memory_space<vmem>>, vector<1x1x8x8xbf16>
    %48 = vector.shape_cast %47 : vector<1x1x8x8xbf16> to vector<8x8xbf16>
    %49 = vector.shape_cast %46 : vector<8x8xbf16> to vector<1x1x8x8xbf16>
    tpu.vector_store %arg8[%c0_19, %c0_20, %c0_21, %c0_22], %49 {strides = array<i32>} : memref<1x4x8x8xbf16, #tpu.memory_space<vmem>>, vector<1x1x8x8xbf16>,
    %50 = vector.extract_strided_slice %38 {offsets = [0, 64], sizes = [8, 8], strides = [1, 1]} : vector<8x96xf32> to vector<8x8xf32>
    %51 = arith.truncf %50 : vector<8x8xf32> to vector<8x8xbf16>
    %c0_23 = arith.constant 0 : index
    %c0_24 = arith.constant 0 : index
    %c0_25 = arith.constant 0 : index
    %c0_26 = arith.constant 0 : index
    %52 = vector.load %arg9[%c0_23, %c0_24, %c0_25, %c0_26] : memref<1x4x8x8xbf16, #tpu.memory_space<vmem>>, vector<1x1x8x8xbf16>
    %53 = vector.shape_cast %52 : vector<1x1x8x8xbf16> to vector<8x8xbf16>
    %54 = vector.shape_cast %51 : vector<8x8xbf16> to vector<1x1x8x8xbf16>
    tpu.vector_store %arg9[%c0_23, %c0_24, %c0_25, %c0_26], %54 {strides = array<i32>} : memref<1x4x8x8xbf16, #tpu.memory_space<vmem>>, vector<1x1x8x8xbf16>,
    %55 = vector.extract_strided_slice %38 {offsets = [0, 8], sizes = [8, 8], strides = [1, 1]} : vector<8x96xf32> to vector<8x8xf32>
    %56 = arith.truncf %55 : vector<8x8xf32> to vector<8x8xbf16>
    %c0_27 = arith.constant 0 : index
    %c1 = arith.constant 1 : index
    %c0_28 = arith.constant 0 : index
    %c0_29 = arith.constant 0 : index
    %57 = vector.load %arg7[%c0_27, %c1, %c0_28, %c0_29] : memref<1x4x8x8xbf16, #tpu.memory_space<vmem>>, vector<1x1x8x8xbf16>
    %58 = vector.shape_cast %57 : vector<1x1x8x8xbf16> to vector<8x8xbf16>
    %59 = vector.shape_cast %56 : vector<8x8xbf16> to vector<1x1x8x8xbf16>
    tpu.vector_store %arg7[%c0_27, %c1, %c0_28, %c0_29], %59 {strides = array<i32>} : memref<1x4x8x8xbf16, #tpu.memory_space<vmem>>, vector<1x1x8x8xbf16>,
    %60 = vector.extract_strided_slice %38 {offsets = [0, 40], sizes = [8, 8], strides = [1, 1]} : vector<8x96xf32> to vector<8x8xf32>
    %61 = tpu.transpose %60, [1, 0] : vector<8x8xf32> -> vector<8x8xf32>
    %62 = arith.truncf %61 : vector<8x8xf32> to vector<8x8xbf16>
    %c0_30 = arith.constant 0 : index
    %c1_31 = arith.constant 1 : index
    %c0_32 = arith.constant 0 : index
    %c0_33 = arith.constant 0 : index
    %63 = vector.load %arg8[%c0_30, %c1_31, %c0_32, %c0_33] : memref<1x4x8x8xbf16, #tpu.memory_space<vmem>>, vector<1x1x8x8xbf16>
    %64 = vector.shape_cast %63 : vector<1x1x8x8xbf16> to vector<8x8xbf16>
    %65 = vector.shape_cast %62 : vector<8x8xbf16> to vector<1x1x8x8xbf16>
    tpu.vector_store %arg8[%c0_30, %c1_31, %c0_32, %c0_33], %65 {strides = array<i32>} : memref<1x4x8x8xbf16, #tpu.memory_space<vmem>>, vector<1x1x8x8xbf16>,
    %66 = vector.extract_strided_slice %38 {offsets = [0, 72], sizes = [8, 8], strides = [1, 1]} : vector<8x96xf32> to vector<8x8xf32>
    %67 = arith.truncf %66 : vector<8x8xf32> to vector<8x8xbf16>
    %c0_34 = arith.constant 0 : index
    %c1_35 = arith.constant 1 : index
    %c0_36 = arith.constant 0 : index
    %c0_37 = arith.constant 0 : index
    %68 = vector.load %arg9[%c0_34, %c1_35, %c0_36, %c0_37] : memref<1x4x8x8xbf16, #tpu.memory_space<vmem>>, vector<1x1x8x8xbf16>
    %69 = vector.shape_cast %68 : vector<1x1x8x8xbf16> to vector<8x8xbf16>
    %70 = vector.shape_cast %67 : vector<8x8xbf16> to vector<1x1x8x8xbf16>
    tpu.vector_store %arg9[%c0_34, %c1_35, %c0_36, %c0_37], %70 {strides = array<i32>} : memref<1x4x8x8xbf16, #tpu.memory_space<vmem>>, vector<1x1x8x8xbf16>,
    %71 = vector.extract_strided_slice %38 {offsets = [0, 16], sizes = [8, 8], strides = [1, 1]} : vector<8x96xf32> to vector<8x8xf32>
    %72 = arith.truncf %71 : vector<8x8xf32> to vector<8x8xbf16>
    %c0_38 = arith.constant 0 : index
    %c2 = arith.constant 2 : index
    %c0_39 = arith.constant 0 : index
    %c0_40 = arith.constant 0 : index
    %73 = vector.load %arg7[%c0_38, %c2, %c0_39, %c0_40] : memref<1x4x8x8xbf16, #tpu.memory_space<vmem>>, vector<1x1x8x8xbf16>
    %74 = vector.shape_cast %73 : vector<1x1x8x8xbf16> to vector<8x8xbf16>
    %75 = vector.shape_cast %72 : vector<8x8xbf16> to vector<1x1x8x8xbf16>
    tpu.vector_store %arg7[%c0_38, %c2, %c0_39, %c0_40], %75 {strides = array<i32>} : memref<1x4x8x8xbf16, #tpu.memory_space<vmem>>, vector<1x1x8x8xbf16>,
    %76 = vector.extract_strided_slice %38 {offsets = [0, 48], sizes = [8, 8], strides = [1, 1]} : vector<8x96xf32> to vector<8x8xf32>
    %77 = tpu.transpose %76, [1, 0] : vector<8x8xf32> -> vector<8x8xf32>
    %78 = arith.truncf %77 : vector<8x8xf32> to vector<8x8xbf16>
    %c0_41 = arith.constant 0 : index
    %c2_42 = arith.constant 2 : index
    %c0_43 = arith.constant 0 : index
    %c0_44 = arith.constant 0 : index
    %79 = vector.load %arg8[%c0_41, %c2_42, %c0_43, %c0_44] : memref<1x4x8x8xbf16, #tpu.memory_space<vmem>>, vector<1x1x8x8xbf16>
    %80 = vector.shape_cast %79 : vector<1x1x8x8xbf16> to vector<8x8xbf16>
    %81 = vector.shape_cast %78 : vector<8x8xbf16> to vector<1x1x8x8xbf16>
    tpu.vector_store %arg8[%c0_41, %c2_42, %c0_43, %c0_44], %81 {strides = array<i32>} : memref<1x4x8x8xbf16, #tpu.memory_space<vmem>>, vector<1x1x8x8xbf16>,
    %82 = vector.extract_strided_slice %38 {offsets = [0, 80], sizes = [8, 8], strides = [1, 1]} : vector<8x96xf32> to vector<8x8xf32>
    %83 = arith.truncf %82 : vector<8x8xf32> to vector<8x8xbf16>
    %c0_45 = arith.constant 0 : index
    %c2_46 = arith.constant 2 : index
    %c0_47 = arith.constant 0 : index
    %c0_48 = arith.constant 0 : index
    %84 = vector.load %arg9[%c0_45, %c2_46, %c0_47, %c0_48] : memref<1x4x8x8xbf16, #tpu.memory_space<vmem>>, vector<1x1x8x8xbf16>
    %85 = vector.shape_cast %84 : vector<1x1x8x8xbf16> to vector<8x8xbf16>
    %86 = vector.shape_cast %83 : vector<8x8xbf16> to vector<1x1x8x8xbf16>
    tpu.vector_store %arg9[%c0_45, %c2_46, %c0_47, %c0_48], %86 {strides = array<i32>} : memref<1x4x8x8xbf16, #tpu.memory_space<vmem>>, vector<1x1x8x8xbf16>,
    %87 = vector.extract_strided_slice %38 {offsets = [0, 24], sizes = [8, 8], strides = [1, 1]} : vector<8x96xf32> to vector<8x8xf32>
    %88 = arith.truncf %87 : vector<8x8xf32> to vector<8x8xbf16>
    %c0_49 = arith.constant 0 : index
    %c3 = arith.constant 3 : index
    %c0_50 = arith.constant 0 : index
    %c0_51 = arith.constant 0 : index
    %89 = vector.load %arg7[%c0_49, %c3, %c0_50, %c0_51] : memref<1x4x8x8xbf16, #tpu.memory_space<vmem>>, vector<1x1x8x8xbf16>
    %90 = vector.shape_cast %89 : vector<1x1x8x8xbf16> to vector<8x8xbf16>
    %91 = vector.shape_cast %88 : vector<8x8xbf16> to vector<1x1x8x8xbf16>
    tpu.vector_store %arg7[%c0_49, %c3, %c0_50, %c0_51], %91 {strides = array<i32>} : memref<1x4x8x8xbf16, #tpu.memory_space<vmem>>, vector<1x1x8x8xbf16>,
    %92 = vector.extract_strided_slice %38 {offsets = [0, 56], sizes = [8, 8], strides = [1, 1]} : vector<8x96xf32> to vector<8x8xf32>
    %93 = tpu.transpose %92, [1, 0] : vector<8x8xf32> -> vector<8x8xf32>
    %94 = arith.truncf %93 : vector<8x8xf32> to vector<8x8xbf16>
    %c0_52 = arith.constant 0 : index
    %c3_53 = arith.constant 3 : index
    %c0_54 = arith.constant 0 : index
    %c0_55 = arith.constant 0 : index
    %95 = vector.load %arg8[%c0_52, %c3_53, %c0_54, %c0_55] : memref<1x4x8x8xbf16, #tpu.memory_space<vmem>>, vector<1x1x8x8xbf16>
    %96 = vector.shape_cast %95 : vector<1x1x8x8xbf16> to vector<8x8xbf16>
    %97 = vector.shape_cast %94 : vector<8x8xbf16> to vector<1x1x8x8xbf16>
    tpu.vector_store %arg8[%c0_52, %c3_53, %c0_54, %c0_55], %97 {strides = array<i32>} : memref<1x4x8x8xbf16, #tpu.memory_space<vmem>>, vector<1x1x8x8xbf16>,
    %98 = vector.extract_strided_slice %38 {offsets = [0, 88], sizes = [8, 8], strides = [1, 1]} : vector<8x96xf32> to vector<8x8xf32>
    %99 = arith.truncf %98 : vector<8x8xf32> to vector<8x8xbf16>
    %c0_56 = arith.constant 0 : index
    %c3_57 = arith.constant 3 : index
    %c0_58 = arith.constant 0 : index
    %c0_59 = arith.constant 0 : index
    %100 = vector.load %arg9[%c0_56, %c3_57, %c0_58, %c0_59] : memref<1x4x8x8xbf16, #tpu.memory_space<vmem>>, vector<1x1x8x8xbf16>
    %101 = vector.shape_cast %100 : vector<1x1x8x8xbf16> to vector<8x8xbf16>
    %102 = vector.shape_cast %99 : vector<8x8xbf16> to vector<1x1x8x8xbf16>
    tpu.vector_store %arg9[%c0_56, %c3_57, %c0_58, %c0_59], %102 {strides = array<i32>} : memref<1x4x8x8xbf16, #tpu.memory_space<vmem>>, vector<1x1x8x8xbf16>,
    return
  }
  func.func @transform_0(%arg0: i32, %arg1: i32) -> (i32, i32, i32) {
    %c0_i32 = arith.constant 0 : i32
    %c0_i32_0 = arith.constant 0 : i32
    return %arg0, %arg1, %c0_i32 : i32, i32, i32
  }
  func.func @transform_1(%arg0: i32, %arg1: i32) -> (i32, i32) {
    %c0_i32 = arith.constant 0 : i32
    %c0_i32_0 = arith.constant 0 : i32
    %c0_i32_1 = arith.constant 0 : i32
    return %c0_i32, %c0_i32_0 : i32, i32
  }
  func.func @transform_2(%arg0: i32, %arg1: i32) -> (i32, i32) {
    %c0_i32 = arith.constant 0 : i32
    %c0_i32_0 = arith.constant 0 : i32
    %c0_i32_1 = arith.constant 0 : i32
    return %c0_i32, %c0_i32_0 : i32, i32
  }
  func.func @transform_3(%arg0: i32, %arg1: i32) -> (i32, i32) {
    %c0_i32 = arith.constant 0 : i32
    %c0_i32_0 = arith.constant 0 : i32
    %c0_i32_1 = arith.constant 0 : i32
    return %c0_i32, %c0_i32_0 : i32, i32
  }
  func.func @transform_4(%arg0: i32, %arg1: i32) -> (i32, i32) {
    %c0_i32 = arith.constant 0 : i32
    %c0_i32_0 = arith.constant 0 : i32
    %c0_i32_1 = arith.constant 0 : i32
    return %c0_i32, %c0_i32_0 : i32, i32
  }
  func.func @transform_5(%arg0: i32, %arg1: i32) -> (i32, i32, i32, i32) {
    %c0_i32 = arith.constant 0 : i32
    %c0_i32_0 = arith.constant 0 : i32
    %c0_i32_1 = arith.constant 0 : i32
    return %arg0, %c0_i32, %arg1, %c0_i32_0 : i32, i32, i32, i32
  }
  func.func @transform_6(%arg0: i32, %arg1: i32) -> (i32, i32, i32, i32) {
    %c0_i32 = arith.constant 0 : i32
    %c0_i32_0 = arith.constant 0 : i32
    %c0_i32_1 = arith.constant 0 : i32
    return %arg0, %c0_i32, %c0_i32_0, %arg1 : i32, i32, i32, i32
  }
  func.func @transform_7(%arg0: i32, %arg1: i32) -> (i32, i32, i32, i32) {
    %c0_i32 = arith.constant 0 : i32
    %c0_i32_0 = arith.constant 0 : i32
    %c0_i32_1 = arith.constant 0 : i32
    return %arg0, %c0_i32, %arg1, %c0_i32_0 : i32, i32, i32, i32
  }
}

</mosaic_0001>

<bundles_post_ra>
// kernel: tpu_custom_call.1
= control target key start
LH: loop header
LB: loop body
LE: loop exit
PB: predicated region body
PF: predicated region fallthrough
CT: control target
= control target key end

     0   :  { %s1886_s0 = inlined_call_operand.hbm [shape: bf16[2,8,32], index: 0, kind: input, shape index: {}]   ;;  %s1887_s1 = inlined_call_operand.hbm [shape: f32[1,32], index: 1, kind: input, shape index: {}]   ;;  %s1888_s2 = inlined_call_operand.hbm [shape: f32[1,32], index: 2, kind: input, shape index: {}]   ;;  %s1889_s3 = inlined_call_operand.hbm [shape: bf16[32,96], index: 3, kind: input, shape index: {}]   ;;  %s1890_s4 = inlined_call_operand.hbm [shape: f32[1,96], index: 4, kind: input, shape index: {}]   ;;  %s1891_s5 = inlined_call_operand.hbm [shape: bf16[2,4,8,8], index: 5, kind: output, shape index: {0}]   ;;  %s1892_s6 = inlined_call_operand.hbm [shape: bf16[2,4,8,8], index: 6, kind: output, shape index: {1}]   ;;  %s1893_s7 = inlined_call_operand.hbm [shape: bf16[2,4,8,8], index: 7, kind: output, shape index: {2}]  }
   0x1   :  { %1900 = sst [smem:[#allocation20_spill]] %s1887_s1 }
   0x2   :  { %1901 = sst [smem:[#allocation21_spill]] %s1888_s2 }
   0x3   :  { %13 = vsyncpa [#allocation3], 0 }
   0x4   :  { %15 = vsyncpa [#allocation3 + $0x1], 0 }
   0x5   :  { %16 = vsyncpa [#allocation6], 0 }
   0x6   :  { %17 = vsyncpa [#allocation9], 0 }
   0x7   :  { %18 = vsyncpa [#allocation4], 0 }
   0x8   :  { %20 = vsyncpa [#allocation4 + $0x1], 0 }
   0x9   :  { %21 = vsyncpa [#allocation13], 0 }
   0xa   :  { %23 = vsyncpa [#allocation13 + $0x1], 0  ;;  %s1483_s24 = smov 0   ;;  %s1485_s25 = smov 0  }
   0xb   :  { %s1487_s26 = smov 0   ;;  %s1489_s27 = smov 0  }
   0xc   :  { %s1491_s28 = smov 0   ;;  %s1493_s29 = smov 0  }
   0xd LB: > { %s1514_s30 = sadd.s32 4294967295, %s1417_s29   ;;  %p926_p0 = scmp.ge.s32.totalorder %s1417_s29, 1  ;;  %s1417_s29 = sphi %s1493_s29, %s29_s29   ;;  %s1413_s28 = sphi %s1491_s28, %s1928_s28   ;;  %s1409_s27 = sphi %s1489_s27, %s1927_s27   ;;  %s1405_s26 = sphi %s1487_s26, %s1926_s26   ;;  %s1401_s25 = sphi %s1485_s25, %s1925_s25   ;;  %s1397_s24 = sphi %s1483_s24, %s1924_s24  }
   0xe   : > { %p1894_p1 = scmp.eq.s32.totalorder %s1514_s30, 0  ;;  %p242_p2 = scmp.lt.s32.totalorder %s1417_s29, 3 }
   0xf   : > { %s1419_s9 = smov [#allocation5]   ;;  %s1420_s11 = smov [#allocation8]  }
  0x10   : > { %p1519_p3 = pnand %p926_p0, %p242_p2  ;;  %s255_s10 = sshll.u32 %s1419_s9, 4  ;;  %s256_s10 = int_to_ptr.vmem [resolvable:$true] %s255_s10 }
  0x11   : > { %s276_s12 = sshll.u32 %s1420_s11, 4  ;;  %s1421_s14 = smov [#allocation7]   ;;  %s1532_s12 = int_to_ptr.vmem [resolvable:$true] %s276_s12 }
  0x12   : > { %s1902_s8 = scalar_select %p1519_p3, 1, 0 }
  0x13   : > { %p1009_p5 = pneg %p1519_p3  ;;  %s1534_s15 = sshll.u32 %s1421_s14, 4  ;;  %s267_s15 = int_to_ptr.vmem [resolvable:$true] %s1534_s15 }
  0x14   : > { %s1904_s1 = sld [smem:[#allocation20_spill]] }
  0x15   : > { %p1528_p6 = pnand %p1009_p5, %p1894_p1 }
  0x17   : > { %p1544_p8 = pneg %p1528_p6 }
  0x1a   : > { %s1125_s18 = scalar_lea.hbm %s1904_s1, 16 }
  0x1b   : > { %p1126_p7 = scmp.ne.s32.totalorder %s1904_s1, %s1125_s18  ;;  %p1132_p11 = scmp.lt.u32.totalorder %s1125_s18, %s1904_s1 }
  0x1d   : > { %p1128_p9 = pnand %p1544_p8, %p1126_p7 }
  0x1f   : > { %p1129_p10 = pneg %p1128_p9 }
  0x21   : > { %p1134_p12 = pnand %p1132_p11, %p1129_p10 }
  0x23   : > { %1137 = shalt.err (!%p1134_p12)
}
  0x24   : > { %s1138_s9 = scalar_lea.vmem %s256_s10, 16  ;;  %s1145_s11 = scalar_lea.vmem %s256_s10, 32 }
  0x25   : > { %p1139_p13 = scmp.ne.s32.totalorder %s256_s10, %s1138_s9  ;;  %p1146_p5 = scmp.lt.s32.totalorder %s256_s10, %s256_s10 }
  0x26   : > { %p1147_p4 = scmp.lt.s32.totalorder %s1145_s11, %s1138_s9 }
  0x27   : > { %p1141_p0 = pnand %p1139_p13, %p1544_p8 }
  0x28   : > { %p1148_p1 = por %p1147_p4, %p1146_p5 }
  0x29   : > { %p1142_p2 = pneg %p1141_p0 }
  0x2b   : > { %p1149_p3 = pnand %p1148_p1, %p1142_p2 }
  0x2d   : > { %1152 = shalt.err (!%p1149_p3)
}
  0x2e   : > { %1012 = dma.hbm_to_vmem [thread:$0]  (!%p1528_p6), %s1904_s1, 16, %s256_s10, [#allocation6]  }
  0x2f   : > { %s1153_s19 = scalar_lea.hbm %s1889_s3, 256 }
  0x30   : > { %p1154_p7 = scmp.ne.s32.totalorder %s1889_s3, %s1153_s19  ;;  %p1160_p1 = scmp.lt.u32.totalorder %s1153_s19, %s1889_s3 }
  0x32   : > { %p1156_p9 = pnand %p1154_p7, %p1544_p8 }
  0x34   : > { %p1157_p4 = pneg %p1156_p9 }
  0x36   : > { %p1162_p3 = pnand %p1160_p1, %p1157_p4 }
  0x38   : > { %1165 = shalt.err (!%p1162_p3)
}
  0x39   : > { %s1166_s10 = scalar_lea.vmem %s1532_s12, 256  ;;  %p1174_p13 = scmp.lt.s32.totalorder %s1532_s12, %s1532_s12 }
  0x3a   : > { %p1167_p10 = scmp.ne.s32.totalorder %s1532_s12, %s1166_s10  ;;  %p1175_p0 = scmp.lt.s32.totalorder %s1166_s10, %s1166_s10 }
  0x3c   : > { %p1169_p11 = pnand %p1167_p10, %p1544_p8  ;;  %p1176_p2 = por %p1175_p0, %p1174_p13 }
  0x3e   : > { %p1170_p12 = pneg %p1169_p11 }
  0x40   : > { %p1177_p5 = pnand %p1176_p2, %p1170_p12 }
  0x42   : > { %1180 = shalt.err (!%p1177_p5)
}
  0x43   : > { %s1422_s11 = smov 64   ;;  %s1423_s14 = smov 4  }
  0x44   : > { %1018 = dma.hbm_to_vmem [thread:$0]  (!%p1528_p6), %s1889_s3, 256, %s1532_s12, [#allocation9], %s1422_s11, %s1422_s11, %s1423_s14  }
  0x45   : > { %s1906_s2 = sld [smem:[#allocation21_spill]] }
  0x4b   : > { %s1181_s20 = scalar_lea.hbm %s1906_s2, 16 }
  0x4c   : > { %p1182_p7 = scmp.ne.s32.totalorder %s1906_s2, %s1181_s20  ;;  %p1188_p1 = scmp.lt.u32.totalorder %s1181_s20, %s1906_s2 }
  0x4e   : > { %p1184_p9 = pnand %p1182_p7, %p1544_p8 }
  0x50   : > { %p1185_p4 = pneg %p1184_p9 }
  0x52   : > { %p1190_p3 = pnand %p1188_p1, %p1185_p4 }
  0x54   : > { %1193 = shalt.err (!%p1190_p3)
}
  0x55   : > { %s1194_s16 = scalar_lea.vmem %s267_s15, 16  ;;  %s1201_s12 = scalar_lea.vmem %s267_s15, 32 }
  0x56   : > { %p1195_p10 = scmp.ne.s32.totalorder %s267_s15, %s1194_s16  ;;  %p1202_p13 = scmp.lt.s32.totalorder %s267_s15, %s267_s15 }
  0x57   : > { %p1203_p0 = scmp.lt.s32.totalorder %s1201_s12, %s1194_s16 }
  0x58   : > { %p1197_p11 = pnand %p1195_p10, %p1544_p8 }
  0x59   : > { %p1204_p2 = por %p1203_p0, %p1202_p13 }
  0x5a   : > { %p1198_p12 = pneg %p1197_p11 }
  0x5c   : > { %p1205_p5 = pnand %p1204_p2, %p1198_p12 }
  0x5e   : > { %1208 = shalt.err (!%p1205_p5)
}
  0x5f   : > { %1015 = dma.hbm_to_vmem [thread:$0]  (!%p1528_p6), %s1906_s2, 16, %s267_s15, [#allocation6]  }
  0x60   : > { %s1424_s17 = smov [#allocation10]   ;;  %s1209_s22 = scalar_lea.hbm %s1890_s4, 16 }
  0x61   : > { %s290_s18 = sshll.u32 %s1424_s17, 4  ;;  %p1210_p7 = scmp.ne.s32.totalorder %s1890_s4, %s1209_s22  ;;  %s291_s18 = int_to_ptr.vmem [resolvable:$true] %s290_s18 }
  0x62   : > { %p1216_p1 = scmp.lt.u32.totalorder %s1209_s22, %s1890_s4 }
  0x63   : > { %p1212_p9 = pnand %p1210_p7, %p1544_p8 }
  0x65   : > { %p1213_p4 = pneg %p1212_p9 }
  0x67   : > { %p1218_p3 = pnand %p1216_p1, %p1213_p4 }
  0x69   : > { %1221 = shalt.err (!%p1218_p3)
}
  0x6a   : > { %s1222_s15 = scalar_lea.vmem %s291_s18, 16  ;;  %s1229_s12 = scalar_lea.vmem %s291_s18, 32 }
  0x6b   : > { %p1223_p10 = scmp.ne.s32.totalorder %s291_s18, %s1222_s15  ;;  %p1230_p13 = scmp.lt.s32.totalorder %s291_s18, %s291_s18 }
  0x6c   : > { %p1231_p0 = scmp.lt.s32.totalorder %s1229_s12, %s1222_s15 }
  0x6d   : > { %p1225_p11 = pnand %p1223_p10, %p1544_p8 }
  0x6e   : > { %p1232_p2 = por %p1231_p0, %p1230_p13 }
  0x6f   : > { %p1226_p12 = pneg %p1225_p11 }
  0x71   : > { %p1233_p5 = pnand %p1232_p2, %p1226_p12 }
  0x73   : > { %1236 = shalt.err (!%p1233_p5)
}
  0x74   : > { %1021 = dma.hbm_to_vmem [thread:$0]  (!%p1528_p6), %s1890_s4, 16, %s291_s18, [#allocation9]  }
  0x75   : > { %s1896_s21 = sadd.s32 4294967294, %s1417_s29   ;;  %s41_s17 = sadd.s32 1, %s1413_s28 }
  0x76   : > { %p43_p8 = scmp.ge.s32.totalorder %s41_s17, 2  ;;  %s50_s13 = sadd.s32 1, %s1405_s26 }
  0x77   : > { %p57_p7 = scmp.ne.s32.totalorder %s1405_s26, %s1401_s25  ;;  %p58_p9 = scmp.eq.s32.totalorder %s1417_s29, 0 }
  0x78   : > { %s1930_s17 = smov (%p43_p8, %s41_s17), 0  ;;  %p63_p1 = scmp.ne.s32.totalorder %s1401_s25, %s1397_s24 }
  0x79   : > { %p1628_p4 = por %p58_p9, %p57_p7  ;;  %s45_s18 = ssub.s32 %s1413_s28, %s1930_s17 }
  0x7a   : > { %p173_p6 = scmp.eq.s32.totalorder %s1514_s30, 1  ;;  %p48_p3 = scmp.eq.s32.totalorder %s45_s18, 0 }
  0x7b   : > { %p1908_p10 = scmp.eq.s32.totalorder %s1514_s30, 0  ;;  %p179_p13 = scmp.eq.s32.totalorder %s1896_s21, 1 }
  0x7c   : > { %p1643_p12 = por %p173_p6, %p57_p7  ;;  %p1040_p2 = scmp.lt.s32.totalorder %s1417_s29, 2 }
  0x7d   : > { %p1639_p11 = por %p1908_p10, %p63_p1  ;;  %p1652_p0 = por %p179_p13, %p63_p1 }
  0x7e   : > { %s1910_s22 = scalar_select %p1643_p12, 1, 0 }
  0x7f   : > { %s1650_s23 = scalar_select %p48_p3, %s1405_s26, %s50_s13  }
  0x80   : > { %s1911_s9 = scalar_select %p1652_p0, 1, 0 }
  0x81   : > { %s301_s10 = sand.u32 1, %s1405_s26   ;;  %s933_s16 = sshll.u32 %s1413_s28, 6 }
  0x82   : > { %s932_s15 = sshll.u32 %s301_s10, 2  ;;  %s1662_s14 = scalar_lea.hbm %s1886_s0, %s933_s16 }
  0x83   : > { %s305_s18 = scalar_lea.vmem [#allocation2], %s932_s15  ;;  %p1666_p5 = pnand %p1040_p2, %p1628_p4 }
  0x84   : > { %s313_s13 = sshll.u32 %s305_s18, 4  ;;  %s302_s1 = scalar_lea.sflag [#allocation3], %s301_s10  ;;  %s1670_s13 = int_to_ptr.vmem [resolvable:$true] %s313_s13 }
  0x85   : > { %s1237_s2 = scalar_lea.hbm %s1662_s14, 64  ;;  %p1239_p7 = pneg %p1666_p5 }
  0x86   : > { %p1238_p8 = scmp.ne.s32.totalorder %s1662_s14, %s1237_s2  ;;  %s1242_s19 = scalar_lea.hbm %s1886_s0, 128 }
  0x87   : > { %p1243_p4 = scmp.lt.u32.totalorder %s1662_s14, %s1886_s0  ;;  %p1244_p6 = scmp.lt.u32.totalorder %s1242_s19, %s1237_s2 }
  0x88   : > { %p1240_p9 = pnand %p1239_p7, %p1238_p8  ;;  %p1246_p10 = scmp.lt.u32.totalorder %s1237_s2, %s1662_s14 }
  0x89   : > { %p1245_p3 = por %p1244_p6, %p1243_p4 }
  0x8a   : > { %p1241_p1 = pneg %p1240_p9 }
  0x8b   : > { %p1247_p13 = por %p1246_p10, %p1245_p3 }
  0x8d   : > { %p1248_p2 = pnand %p1247_p13, %p1241_p1 }
  0x8f   : > { %1251 = shalt.err (!%p1248_p2)
}
  0x90   : > { %s1252_s10 = scalar_lea.vmem %s1670_s13, 64  ;;  %s1425_s18 = smov [#allocation2]  }
  0x91   : > { %p1253_p8 = scmp.ne.s32.totalorder %s1670_s13, %s1252_s10  ;;  %s1257_s16 = sshll.u32 %s1425_s18, 4  ;;  %s1258_s16 = int_to_ptr.vmem [resolvable:$false] %s1257_s16 }
  0x92   : > { %s1259_s15 = scalar_lea.vmem %s1258_s16, 128  ;;  %p1260_p12 = scmp.lt.s32.totalorder %s1670_s13, %s1258_s16 }
  0x93   : > { %p1255_p9 = pnand %p1253_p8, %p1239_p7  ;;  %p1261_p4 = scmp.lt.s32.totalorder %s1259_s15, %s1252_s10 }
  0x95   : > { %p1256_p0 = pneg %p1255_p9  ;;  %p1262_p6 = por %p1261_p4, %p1260_p12 }
  0x97   : > { %p1263_p3 = pnand %p1262_p6, %p1256_p0 }
  0x99   : > { %1266 = shalt.err (!%p1263_p3)
}
  0x9a   : > { %1025 = dma.hbm_to_vmem [thread:$0]  (!%p1666_p5), %s1662_s14, 64, %s1670_s13, %s302_s1  }
  0x9b   : > { %p1913_p1 = scmp.ne.s32.totalorder %s1902_s8, 0 }
  0x9c   : > { %s1700_s2 = sand.u32 (!%p1913_p1), 1, %s1401_s25  }
  0x9d   : > { %322 = sbr.rel (%p1913_p1) target bundleno = 1020 (0x3fc), region = 40  ;;  %s935_s19 = sshll.u32 (!%p1913_p1), %s1700_s2, 2 }
  0x9e   : > { %s325_s12 = scalar_lea.sflag (!%p1913_p1), [#allocation3], %s1700_s2  ;;  %s328_s11 = scalar_lea.vmem (!%p1913_p1), [#allocation2], %s935_s19 }
  0xa4   : > { %1376 = dma.done.wait (%p1639_p11), %s325_s12, 64  }
  0xa5   : > { %1378 = vsyncadd (%p1639_p11), %s325_s12, 4294967232  ;;  %p1914_p12 = scmp.eq.s32.totalorder %s1514_s30, 0 }
  0xa7   : > { %1380 = dma.done.wait (%p1914_p12), [#allocation6], 32   ;;  %p1915_p0 = pmov %p1914_p12 }
  0xa9   : > { %1382 = vsyncadd (%p1915_p0), [#allocation6], 4294967264  ;;  %p1916_p5 = pmov %p1915_p0 }
  0xaa   : > { %p1917_p7 = pmov %p1915_p0 }
  0xab   : > { %1384 = dma.done.wait (%p1916_p5), [#allocation9], 272  }
  0xac   : > { %1386 = vsyncadd (%p1917_p7), [#allocation9], 4294967024  ;;  %vm390_vm0 = vcmask 261120   ;;  %v386_v0 = vld [vmem:[%s328_s11] sm:$0xf]  ;;  %v1121_v8 = vld [vmem:[#allocation8] sm:$0xff]  }
  0xad   : > { %v387_v1 = vunpack.c.l.bf16 %v386_v0  ;;  %v1426_v9 = vmov 0.0   ;;  %vm1427_vm1 = vmmov 0   ;;  %v1122_v10 = vld [vmem:[#allocation8 + $0x8] sm:$0xff]   ;;  %v943_v15 = vld [vmem:[#allocation5] ss:$0 sm:$0xff]  ;;  %s1720_s1 = sshll.u32 %s1700_s2, 4 }
  0xae   : > { %977 = vmatprep.subr.bf16.mxu0 %v1426_v9  ;;  %981 = vmatprep.mubr.msk.bf16.mxu0 %vm1427_vm1, %v1426_v9  ;;  %v944_v17 = vld [vmem:[#allocation7] ss:$0 sm:$0xff]  ;;  %v945_v21 = vld [vmem:[#allocation10] ss:$0 sm:$0xff]  ;;  %vm487_vm2 = vcmask 60416   ;;  %s1428_s8 = smov 88  }
  0xaf   : > { %v391_v2 = vsel %vm390_vm0, %v387_v1, 0.0  ;;  %978 = vmatpush3.bf16.msra.mxu0 %v1121_v8  ;;  %s1429_s21 = smov 96   ;;  %s1723_s20 = scalar_lea.vmem [#allocation11], %s1720_s1 }
  0xb0   : > { %392 = vadd.xlane.f32.xlu0 %v391_v2  ;;  %979 = vmatprep.subr.bf16.mxu0 %v1426_v9  ;;  %s1430_s14 = smov 80   ;;  %s1431_s13 = smov 72  }
  0xb1   : > { %s1432_s10 = smov 56   ;;  %s1898_s18 = smov 64  }
  0xb2   : > { %s1434_s16 = smov 112   ;;  %s1435_s15 = smov 120  }
  0xb3   : > { %980 = vmatpush3.bf16.msra.mxu0 %v1122_v10  ;;  %s1729_s19 = scalar_lea.vmem [#allocation14], %s1720_s1  ;;  %s1436_s12 = smov 48  }
  0xb4   : > { %s1437_s11 = smov 104   ;;  %p1918_p10 = scmp.ne.s32.totalorder %s1910_s22, 0 }
 0x13d   : > { %v393_v3 = vpop.xlane.xlu0 %392 }
 0x13e   : > { %v395_v4 = vmul.f32 0.03125, %v393_v3 }
 0x140   : > { %v396_v5 = vsub.f32 %v387_v1, %v395_v4 }
 0x142   : > { %v397_v6 = vmul.f32 %v396_v5, %v396_v5 }
 0x144   : > { %v398_v7 = vsel %vm390_vm0, %v397_v6, 0.0 }
 0x145   : > { %399 = vadd.xlane.f32.xlu0 %v398_v7 }
 0x1d2   : > { %v400_v11 = vpop.xlane.xlu0 %399 }
 0x1d3   : > { %v401_v12 = vmul.f32 0.03125, %v400_v11 }
 0x1d5   : > { %v402_v13 = vadd.f32 1e-05, %v401_v12 }
 0x1d7   : > { %1123 = vrsqrt.f32 %v402_v13 }
 0x1e1   : > { %v1124_v14 = vpop.eup %1123 }
 0x1e2   : > { %v404_v16 = vmul.f32 %v1124_v14, %v396_v5 }
 0x1e4   : > { %v411_v18 = vmul.f32 %v943_v15, %v404_v16 }
 0x1e6   : > { %v418_v19 = vadd.f32 %v944_v17, %v411_v18 }
 0x1e8   : > { %v419_v20 = vpack.c.bf16 %v418_v19, %v418_v19 }
 0x1ea   : > { %982 = vmatmul.mubr.msk.bf16.vlgmr.msra.gmra.mrb[0].mxu0 %vm390_vm0, %v419_v20 }
 0x2bd   : > { %v480_v22 = vpop.f32.mrb[0].mxu0 }
 0x2be   : > { %v481_v23 = vadd.f32 %v945_v21, %v480_v22  ;;  %v983_v24 = vpop.f32.mrb[1].mxu0 }
 0x2bf   : > { %v483_v25 = vpop.f32.mrb[2].mxu0 }
 0x2c0   : > { %v486_v26 = vpack.c.bf16 %v481_v23, %v481_v23  ;;  %539 = vrot.lane.b32.xlu0 %v481_v23, %s1428_s8  ;;  %490 = vrot.lane.b32.xlu1 %v481_v23, %s1429_s21  ;;  %v984_v27 = vpop.f32.mrb[3].mxu0  ;;  %s1438_s8 = smov 40   ;;  %s377_s21 = scalar_lea.vmem [#allocation12], %s1720_s1 }
 0x2c2   : > { %488 = vst.msk [vmem:[%s1723_s20] sm:$0xf] %vm487_vm2, %v486_v26 }
 0x2c4   : > { %587 = vrot.lane.b32.xlu0 %v481_v23, %s1430_s14  ;;  %635 = vrot.lane.b32.xlu1 %v481_v23, %s1431_s13  ;;  %s720_s14 = sshll.u32 %s377_s21, 4  ;;  %s683_s13 = sand.u32 1, %s1514_s30   ;;  %s1746_s14 = int_to_ptr.vmem [resolvable:$true] %s720_s14 }
 0x2c5   : > { %s1267_s30 = scalar_lea.vmem %s1746_s14, 256 }
 0x2c6   : > { %p1268_p11 = scmp.ne.s32.totalorder %s1746_s14, %s1267_s30 }
 0x2c8   : > { %577 = vrot.lane.b32.xlu1 %v486_v26, %s1432_s10  ;;  %530 = vrot.lane.b32.xlu0 %v486_v26, %s1898_s18  ;;  %s1744_s10 = sshll.u32 %s1409_s27, 8  ;;  %s1756_s27 = scalar_lea.sflag [#allocation13], %s683_s13 }
 0x2c9   : > { %p1269_p13 = pnand %p1268_p11, %p1918_p10 }
 0x2cb   : > { %p1270_p2 = pneg %p1269_p13 }
 0x2cc   : > { %582 = vrot.lane.b32.xlu1 %v486_v26, %s1434_s16  ;;  %534 = vrot.lane.b32.xlu0 %v486_v26, %s1435_s15  ;;  %s1752_s15 = scalar_lea.hbm %s1892_s6, %s1744_s10 }
 0x332   : > { %v540_v28 = vpop.permute.xlu0 %539  ;;  %v491_v29 = vpop.permute.xlu1 %490 }
 0x333   : > { %493 = vxpose.xlu1.b32.start.end [1/1] (short) (narrow) %v491_v29, 8  ;;  %542 = vxpose.xlu0.b32.start.end [1/1] (short) (narrow) %v540_v28, 8 }
 0x336   : > { %v588_v30 = vpop.permute.xlu0 %587  ;;  %v636_v31 = vpop.permute.xlu1 %635 }
 0x337   : > { %v1114_v32 = vpack.i.bf16 %v636_v31, %v588_v30 }
 0x339   : > { %1115 = vxpose.xlu1.b32.start.end [1/1] (short) (narrow) %v1114_v32, 8 }
 0x33a   : > { %v578_v33 = vpop.permute.xlu1 %577  ;;  %v531_v34 = vpop.permute.xlu0 %530 }
 0x33b   : > { %952 = vst.msk [vmem:[%s1729_s19 + $0x4] sm:$0xf] %vm487_vm2, %v578_v33  ;;  %533 = vst.msk [vmem:[%s1729_s19] sm:$0xf] %vm487_vm2, %v531_v34 }
 0x33e   : > { %v583_v35 = vpop.permute.xlu1 %582  ;;  %v535_v36 = vpop.permute.xlu0 %534 }
 0x33f   : > { %953 = vst.msk [vmem:[%s1723_s20 + $0x8] sm:$0xf] %vm487_vm2, %v583_v35  ;;  %950 = vst.msk [vmem:[%s1723_s20 + $0x4] sm:$0xf] %vm487_vm2, %v535_v36 }
 0x35c   : > { %625 = vrot.lane.b32.xlu0 %v486_v26, %s1436_s12  ;;  %s1439_s12 = smov [#allocation12]  }
 0x360   : > { %630 = vrot.lane.b32.xlu0 %v486_v26, %s1437_s11  ;;  %s1271_s11 = sshll.u32 %s1439_s12, 4  ;;  %s1272_s11 = int_to_ptr.vmem [resolvable:$false] %s1271_s11 }
 0x361   : > { %p1274_p8 = scmp.lt.s32.totalorder %s1746_s14, %s1272_s11 }
 0x364   : > { %673 = vrot.lane.b32.xlu0 %v486_v26, %s1438_s8  ;;  %s1273_s8 = scalar_lea.vmem %s1272_s11, 512 }
 0x365   : > { %p1275_p9 = scmp.lt.s32.totalorder %s1273_s8, %s1267_s30 }
 0x367   : > { %p1276_p4 = por %p1275_p9, %p1274_p8 }
 0x369   : > { %p1277_p6 = pnand %p1276_p4, %p1270_p2 }
 0x3b3   : > { %v558_v37 = vpop.trf.xlu0  ;;  %v509_v38 = vpop.trf.xlu1 }
 0x3b4   : > { %v574_v39 = vpack.c.bf16 %v558_v37, %v558_v37  ;;  %v525_v40 = vpack.c.bf16 %v509_v38, %v509_v38 }
 0x3b6   : > { %951 = vst.msk [vmem:[%s377_s21 + $0x4] sm:$0xf] %vm487_vm2, %v574_v39  ;;  %526 = vst.msk [vmem:[%s377_s21] sm:$0xf] %vm487_vm2, %v525_v40 }
 0x3b9   : > { %v1116_v41 = vpop.trf.xlu1 }
 0x3ba   : > { %v1120_v42 = vunpack.i.h.bf16 %v1116_v41  ;;  %v1117_v43 = vunpack.i.l.bf16 %v1116_v41 }
 0x3bc   : > { %v670_v44 = vpack.c.bf16 %v1120_v42, %v1120_v42  ;;  %v622_v45 = vpack.c.bf16 %v1117_v43, %v1117_v43 }
 0x3be   : > { %957 = vst.msk [vmem:[%s377_s21 + $0xc] sm:$0xf] %vm487_vm2, %v670_v44  ;;  %954 = vst.msk [vmem:[%s377_s21 + $0x8] sm:$0xf] %vm487_vm2, %v622_v45 }
 0x3bf   : > { %1280 = shalt.err (!%p1277_p6)
}
 0x3c0   : > { %s1281_s21 = scalar_lea.hbm %s1752_s15, 256  ;;  %s1285_s16 = scalar_lea.hbm %s1892_s6, 512 }
 0x3c1   : > { %p1282_p3 = scmp.ne.s32.totalorder %s1752_s15, %s1281_s21  ;;  %p1286_p0 = scmp.lt.u32.totalorder %s1752_s15, %s1892_s6 }
 0x3c2   : > { %p1287_p5 = scmp.lt.u32.totalorder %s1285_s16, %s1281_s21  ;;  %p1289_p11 = scmp.lt.u32.totalorder %s1281_s21, %s1752_s15 }
 0x3c3   : > { %p1283_p1 = pnand %p1282_p3, %p1918_p10 }
 0x3c4   : > { %p1288_p7 = por %p1287_p5, %p1286_p0 }
 0x3c5   : > { %p1284_p12 = pneg %p1283_p1 }
 0x3c6   : > { %p1290_p13 = por %p1289_p11, %p1288_p7 }
 0x3c8   : > { %p1291_p2 = pnand %p1290_p13, %p1284_p12 }
 0x3ca   : > { %1294 = shalt.err (!%p1291_p2)
}
 0x3cb   : > { %s1440_s30 = smov 4   ;;  %s703_s8 = sshll.u32 %s1723_s20, 4  ;;  %s1786_s8 = int_to_ptr.vmem [resolvable:$true] %s703_s8 }
 0x3cc   : > { %1004 = dma.vmem_to_hbm [thread:$0]  (%p1918_p10), %s1746_s14, 256, %s1752_s15, %s1756_s27, %s1898_s18, %s1898_s18, %s1440_s30  }
 0x3cd   : > { %s1792_s1 = scalar_lea.hbm %s1891_s5, %s1744_s10  ;;  %s679_s12 = scalar_lea.sflag [#allocation4], %s1700_s2 }
 0x3ce   : > { %v626_v46 = vpop.permute.xlu0 %625  ;;  %s1295_s14 = scalar_lea.vmem %s1786_s8, 256  ;;  %s1441_s15 = smov [#allocation11]  }
 0x3cf   : > { %955 = vst.msk [vmem:[%s1729_s19 + $0x8] sm:$0xf] %vm487_vm2, %v626_v46  ;;  %p1296_p8 = scmp.ne.s32.totalorder %s1786_s8, %s1295_s14  ;;  %s1299_s11 = sshll.u32 %s1441_s15, 4  ;;  %s1300_s11 = int_to_ptr.vmem [resolvable:$false] %s1299_s11 }
 0x3d0   : > { %s1301_s18 = scalar_lea.vmem %s1300_s11, 512  ;;  %p1302_p6 = scmp.lt.s32.totalorder %s1786_s8, %s1300_s11 }
 0x3d1   : > { %p1297_p9 = pnand %p1296_p8, %p1918_p10  ;;  %p1303_p3 = scmp.lt.s32.totalorder %s1301_s18, %s1295_s14 }
 0x3d2   : > { %v631_v47 = vpop.permute.xlu0 %630 }
 0x3d3   : > { %956 = vst.msk [vmem:[%s1723_s20 + $0xc] sm:$0xf] %vm487_vm2, %v631_v47  ;;  %p1298_p4 = pneg %p1297_p9  ;;  %p1304_p1 = por %p1303_p3, %p1302_p6 }
 0x3d5   : > { %p1305_p12 = pnand %p1304_p1, %p1298_p4 }
 0x3d7   : > { %1308 = shalt.err (!%p1305_p12)
}
 0x3d8   : > { %s1309_s20 = scalar_lea.hbm %s1792_s1, 256  ;;  %s1313_s15 = scalar_lea.hbm %s1891_s5, 512 }
 0x3d9   : > { %p1310_p0 = scmp.ne.s32.totalorder %s1792_s1, %s1309_s20  ;;  %p1314_p11 = scmp.lt.u32.totalorder %s1792_s1, %s1891_s5 }
 0x3da   : > { %p1315_p13 = scmp.lt.u32.totalorder %s1313_s15, %s1309_s20  ;;  %p1317_p8 = scmp.lt.u32.totalorder %s1309_s20, %s1792_s1 }
 0x3db   : > { %p1311_p5 = pnand %p1310_p0, %p1918_p10 }
 0x3dc   : > { %p1316_p2 = por %p1315_p13, %p1314_p11 }
 0x3dd   : > { %p1312_p7 = pneg %p1311_p5 }
 0x3de   : > { %p1318_p9 = por %p1317_p8, %p1316_p2 }
 0x3e0   : > { %p1319_p4 = pnand %p1318_p9, %p1312_p7 }
 0x3e2   : > { %1322 = shalt.err (!%p1319_p4)
}
 0x3e3   : > { %s1919_s18 = smov 64   ;;  %s1920_s16 = sshll.u32 %s1729_s19, 4  ;;  %v674_v48 = vpop.permute.xlu0 %673  ;;  %s1826_s16 = int_to_ptr.vmem [resolvable:$true] %s1920_s16 }
 0x3e4   : > { %1003 = dma.vmem_to_hbm [thread:$0]  (%p1918_p10), %s1786_s8, 256, %s1792_s1, %s679_s12, %s1919_s18, %s1919_s18, %s1440_s30  }
 0x3e5   : > { %s1832_s21 = scalar_lea.hbm %s1893_s7, %s1744_s10  ;;  %958 = vst.msk [vmem:[%s1729_s19 + $0xc] sm:$0xf] %vm487_vm2, %v674_v48  ;;  %s1323_s2 = scalar_lea.vmem %s1826_s16, 256 }
 0x3e6   : > { %p1324_p6 = scmp.ne.s32.totalorder %s1826_s16, %s1323_s2  ;;  %s1442_s8 = smov [#allocation14]  }
 0x3e7   : > { %s1327_s1 = sshll.u32 %s1442_s8, 4  ;;  %s1328_s1 = int_to_ptr.vmem [resolvable:$false] %s1327_s1 }
 0x3e8   : > { %p1325_p3 = pnand %p1324_p6, %p1918_p10  ;;  %s1329_s12 = scalar_lea.vmem %s1328_s1, 512 }
 0x3e9   : > { %p1330_p12 = scmp.lt.s32.totalorder %s1826_s16, %s1328_s1  ;;  %p1331_p0 = scmp.lt.s32.totalorder %s1329_s12, %s1323_s2 }
 0x3ea   : > { %p1326_p1 = pneg %p1325_p3 }
 0x3eb   : > { %p1332_p5 = por %p1331_p0, %p1330_p12 }
 0x3ed   : > { %p1333_p7 = pnand %p1332_p5, %p1326_p1 }
 0x3ef   : > { %1336 = shalt.err (!%p1333_p7)
}
 0x3f0   : > { %s1337_s19 = scalar_lea.hbm %s1832_s21, 256  ;;  %s1341_s15 = scalar_lea.hbm %s1893_s7, 512 }
 0x3f1   : > { %p1338_p11 = scmp.ne.s32.totalorder %s1832_s21, %s1337_s19  ;;  %p1342_p8 = scmp.lt.u32.totalorder %s1832_s21, %s1893_s7 }
 0x3f2   : > { %p1343_p9 = scmp.lt.u32.totalorder %s1341_s15, %s1337_s19  ;;  %p1345_p6 = scmp.lt.u32.totalorder %s1337_s19, %s1832_s21 }
 0x3f3   : > { %p1339_p13 = pnand %p1338_p11, %p1918_p10 }
 0x3f4   : > { %p1344_p4 = por %p1343_p9, %p1342_p8 }
 0x3f5   : > { %p1340_p2 = pneg %p1339_p13 }
 0x3f6   : > { %p1346_p3 = por %p1345_p6, %p1344_p4 }
 0x3f8   : > { %p1347_p1 = pnand %p1346_p3, %p1340_p2 }
 0x3fa   : > { %1350 = shalt.err (!%p1347_p1)
}
 0x3fb   : > { %1005 = dma.vmem_to_hbm [thread:$0]  (%p1918_p10), %s1826_s16, 256, %s1832_s21, %s1756_s27, %s1919_s18, %s1919_s18, %s1440_s30  }
 0x3fc PF: > { %s752_s20 = sand.u32 1, %s1397_s24   ;;  %p1921_p12 = scmp.ne.s32.totalorder %s1911_s9, 0 }
 0x3fd   : > { %p1922_p0 = scmp.ge.s32.totalorder %s1417_s29, 2  ;;  %s753_s2 = scalar_lea.sflag [#allocation4], %s752_s20 }
 0x3ff   : > { %p1027_p5 = pnand %p1922_p0, %p1921_p12 }
 0x401   : > { %1388 = dma.done.wait (!%p1027_p5), %s753_s2, 256  }
 0x402   : > { %1390 = vsyncadd (!%p1027_p5), %s753_s2, 4294967040  ;;  %s1923_s22 = sadd.s32 4294967294, %s1417_s29  }
 0x403   : > { %s761_s8 = sand.u32 1, %s1923_s22  }
 0x404   : > { %s762_s1 = scalar_lea.sflag [#allocation13], %s761_s8 }
 0x405   : > { %1392 = dma.done.wait (!%p1027_p5), %s762_s1, 512  }
 0x406   : > { %1394 = vsyncadd (!%p1027_p5), %s762_s1, 4294966784  ;;  %s29_s29 = sadd.s32 1, %s1417_s29   ;;  %s1924_s24 = smov %s1401_s25 }
 0x407   : > { %p26_p10 = scmp.ge.s32.totalorder %s29_s29, 4   ;;  %s1925_s25 = smov %s1405_s26 }
 0x408   : > { %s1926_s26 = smov %s1650_s23  ;;  %s1927_s27 = smov %s1413_s28 }
 0x409   : > { %s1928_s28 = smov %s1930_s17  ;;  %28 = sbr.rel (!%p26_p10) target bundleno = 13 (0xd), region = 142 }
 0x410   :  { %776 = vsyncpa [#allocation3], 1 }
 0x411   :  { %778 = vsyncpa [#allocation3 + $0x1], 1 }
 0x412   :  { %779 = vsyncpa [#allocation6], 1 }
 0x413   :  { %780 = vsyncpa [#allocation9], 1 }
 0x414   :  { %781 = vsyncpa [#allocation4], 1 }
 0x415   :  { %783 = vsyncpa [#allocation4 + $0x1], 1 }
 0x416   :  { %784 = vsyncpa [#allocation13], 1 }
 0x417   :  { %786 = vsyncpa [#allocation13 + $0x1], 1 }

// kernel: tpu_custom_call.1
= control target key start
LH: loop header
LB: loop body
LE: loop exit
PB: predicated region body
PF: predicated region fallthrough
CT: control target
= control target key end

     0   :  { %s1886_s0 = inlined_call_operand.hbm [shape: bf16[2,8,32], index: 0, kind: input, shape index: {}]   ;;  %s1887_s1 = inlined_call_operand.hbm [shape: f32[1,32], index: 1, kind: input, shape index: {}]   ;;  %s1888_s2 = inlined_call_operand.hbm [shape: f32[1,32], index: 2, kind: input, shape index: {}]   ;;  %s1889_s3 = inlined_call_operand.hbm [shape: bf16[32,96], index: 3, kind: input, shape index: {}]   ;;  %s1890_s4 = inlined_call_operand.hbm [shape: f32[1,96], index: 4, kind: input, shape index: {}]   ;;  %s1891_s5 = inlined_call_operand.hbm [shape: bf16[2,4,8,8], index: 5, kind: output, shape index: {0}]   ;;  %s1892_s6 = inlined_call_operand.hbm [shape: bf16[2,4,8,8], index: 6, kind: output, shape index: {1}]   ;;  %s1893_s7 = inlined_call_operand.hbm [shape: bf16[2,4,8,8], index: 7, kind: output, shape index: {2}]  }
   0x1   :  { %1900 = sst [smem:[#allocation20_spill]] %s1887_s1 }
   0x2   :  { %1901 = sst [smem:[#allocation21_spill]] %s1888_s2 }
   0x3   :  { %13 = vsyncpa [#allocation3], 0 }
   0x4   :  { %15 = vsyncpa [#allocation3 + $0x1], 0 }
   0x5   :  { %16 = vsyncpa [#allocation6], 0 }
   0x6   :  { %17 = vsyncpa [#allocation9], 0 }
   0x7   :  { %18 = vsyncpa [#allocation4], 0 }
   0x8   :  { %20 = vsyncpa [#allocation4 + $0x1], 0 }
   0x9   :  { %21 = vsyncpa [#allocation13], 0 }
   0xa   :  { %23 = vsyncpa [#allocation13 + $0x1], 0  ;;  %s1483_s24 = smov 0   ;;  %s1485_s25 = smov 0  }
   0xb   :  { %s1487_s26 = smov 0   ;;  %s1489_s27 = smov 0  }
   0xc   :  { %s1491_s28 = smov 0   ;;  %s1493_s29 = smov 0  }
   0xd LB: > { %s1514_s30 = sadd.s32 4294967295, %s1417_s29   ;;  %p926_p0 = scmp.ge.s32.totalorder %s1417_s29, 1  ;;  %s1417_s29 = sphi %s1493_s29, %s29_s29   ;;  %s1413_s28 = sphi %s1491_s28, %s1928_s28   ;;  %s1409_s27 = sphi %s1489_s27, %s1927_s27   ;;  %s1405_s26 = sphi %s1487_s26, %s1926_s26   ;;  %s1401_s25 = sphi %s1485_s25, %s1925_s25   ;;  %s1397_s24 = sphi %s1483_s24, %s1924_s24  }
   0xe   : > { %p1894_p1 = scmp.eq.s32.totalorder %s1514_s30, 0  ;;  %p242_p2 = scmp.lt.s32.totalorder %s1417_s29, 3 }
   0xf   : > { %s1419_s9 = smov [#allocation5]   ;;  %s1420_s11 = smov [#allocation8]  }
  0x10   : > { %p1519_p3 = pnand %p926_p0, %p242_p2  ;;  %s255_s10 = sshll.u32 %s1419_s9, 4  ;;  %s256_s10 = int_to_ptr.vmem [resolvable:$true] %s255_s10 }
  0x11   : > { %s276_s12 = sshll.u32 %s1420_s11, 4  ;;  %s1421_s14 = smov [#allocation7]   ;;  %s1532_s12 = int_to_ptr.vmem [resolvable:$true] %s276_s12 }
  0x12   : > { %s1902_s8 = scalar_select %p1519_p3, 1, 0 }
  0x13   : > { %p1009_p5 = pneg %p1519_p3  ;;  %s1534_s15 = sshll.u32 %s1421_s14, 4  ;;  %s267_s15 = int_to_ptr.vmem [resolvable:$true] %s1534_s15 }
  0x14   : > { %s1904_s1 = sld [smem:[#allocation20_spill]] }
  0x15   : > { %p1528_p6 = pnand %p1009_p5, %p1894_p1 }
  0x17   : > { %p1544_p8 = pneg %p1528_p6 }
  0x1a   : > { %s1125_s18 = scalar_lea.hbm %s1904_s1, 16 }
  0x1b   : > { %p1126_p7 = scmp.ne.s32.totalorder %s1904_s1, %s1125_s18  ;;  %p1132_p11 = scmp.lt.u32.totalorder %s1125_s18, %s1904_s1 }
  0x1d   : > { %p1128_p9 = pnand %p1544_p8, %p1126_p7 }
  0x1f   : > { %p1129_p10 = pneg %p1128_p9 }
  0x21   : > { %p1134_p12 = pnand %p1132_p11, %p1129_p10 }
  0x23   : > { %1137 = shalt.err (!%p1134_p12)
}
  0x24   : > { %s1138_s9 = scalar_lea.vmem %s256_s10, 16  ;;  %s1145_s11 = scalar_lea.vmem %s256_s10, 32 }
  0x25   : > { %p1139_p13 = scmp.ne.s32.totalorder %s256_s10, %s1138_s9  ;;  %p1146_p5 = scmp.lt.s32.totalorder %s256_s10, %s256_s10 }
  0x26   : > { %p1147_p4 = scmp.lt.s32.totalorder %s1145_s11, %s1138_s9 }
  0x27   : > { %p1141_p0 = pnand %p1139_p13, %p1544_p8 }
  0x28   : > { %p1148_p1 = por %p1147_p4, %p1146_p5 }
  0x29   : > { %p1142_p2 = pneg %p1141_p0 }
  0x2b   : > { %p1149_p3 = pnand %p1148_p1, %p1142_p2 }
  0x2d   : > { %1152 = shalt.err (!%p1149_p3)
}
  0x2e   : > { %1012 = dma.hbm_to_vmem [thread:$0]  (!%p1528_p6), %s1904_s1, 16, %s256_s10, [#allocation6]  }
  0x2f   : > { %s1153_s19 = scalar_lea.hbm %s1889_s3, 256 }
  0x30   : > { %p1154_p7 = scmp.ne.s32.totalorder %s1889_s3, %s1153_s19  ;;  %p1160_p1 = scmp.lt.u32.totalorder %s1153_s19, %s1889_s3 }
  0x32   : > { %p1156_p9 = pnand %p1154_p7, %p1544_p8 }
  0x34   : > { %p1157_p4 = pneg %p1156_p9 }
  0x36   : > { %p1162_p3 = pnand %p1160_p1, %p1157_p4 }
  0x38   : > { %1165 = shalt.err (!%p1162_p3)
}
  0x39   : > { %s1166_s10 = scalar_lea.vmem %s1532_s12, 256  ;;  %p1174_p13 = scmp.lt.s32.totalorder %s1532_s12, %s1532_s12 }
  0x3a   : > { %p1167_p10 = scmp.ne.s32.totalorder %s1532_s12, %s1166_s10  ;;  %p1175_p0 = scmp.lt.s32.totalorder %s1166_s10, %s1166_s10 }
  0x3c   : > { %p1169_p11 = pnand %p1167_p10, %p1544_p8  ;;  %p1176_p2 = por %p1175_p0, %p1174_p13 }
  0x3e   : > { %p1170_p12 = pneg %p1169_p11 }
  0x40   : > { %p1177_p5 = pnand %p1176_p2, %p1170_p12 }
  0x42   : > { %1180 = shalt.err (!%p1177_p5)
}
  0x43   : > { %s1422_s11 = smov 64   ;;  %s1423_s14 = smov 4  }
  0x44   : > { %1018 = dma.hbm_to_vmem [thread:$0]  (!%p1528_p6), %s1889_s3, 256, %s1532_s12, [#allocation9], %s1422_s11, %s1422_s11, %s1423_s14  }
  0x45   : > { %s1906_s2 = sld [smem:[#allocation21_spill]] }
  0x4b   : > { %s1181_s20 = scalar_lea.hbm %s1906_s2, 16 }
  0x4c   : > { %p1182_p7 = scmp.ne.s32.totalorder %s1906_s2, %s1181_s20  ;;  %p1188_p1 = scmp.lt.u32.totalorder %s1181_s20, %s1906_s2 }
  0x4e   : > { %p1184_p9 = pnand %p1182_p7, %p1544_p8 }
  0x50   : > { %p1185_p4 = pneg %p1184_p9 }
  0x52   : > { %p1190_p3 = pnand %p1188_p1, %p1185_p4 }
  0x54   : > { %1193 = shalt.err (!%p1190_p3)
}
  0x55   : > { %s1194_s16 = scalar_lea.vmem %s267_s15, 16  ;;  %s1201_s12 = scalar_lea.vmem %s267_s15, 32 }
  0x56   : > { %p1195_p10 = scmp.ne.s32.totalorder %s267_s15, %s1194_s16  ;;  %p1202_p13 = scmp.lt.s32.totalorder %s267_s15, %s267_s15 }
  0x57   : > { %p1203_p0 = scmp.lt.s32.totalorder %s1201_s12, %s1194_s16 }
  0x58   : > { %p1197_p11 = pnand %p1195_p10, %p1544_p8 }
  0x59   : > { %p1204_p2 = por %p1203_p0, %p1202_p13 }
  0x5a   : > { %p1198_p12 = pneg %p1197_p11 }
  0x5c   : > { %p1205_p5 = pnand %p1204_p2, %p1198_p12 }
  0x5e   : > { %1208 = shalt.err (!%p1205_p5)
}
  0x5f   : > { %1015 = dma.hbm_to_vmem [thread:$0]  (!%p1528_p6), %s1906_s2, 16, %s267_s15, [#allocation6]  }
  0x60   : > { %s1424_s17 = smov [#allocation10]   ;;  %s1209_s22 = scalar_lea.hbm %s1890_s4, 16 }
  0x61   : > { %s290_s18 = sshll.u32 %s1424_s17, 4  ;;  %p1210_p7 = scmp.ne.s32.totalorder %s1890_s4, %s1209_s22  ;;  %s291_s18 = int_to_ptr.vmem [resolvable:$true] %s290_s18 }
  0x62   : > { %p1216_p1 = scmp.lt.u32.totalorder %s1209_s22, %s1890_s4 }
  0x63   : > { %p1212_p9 = pnand %p1210_p7, %p1544_p8 }
  0x65   : > { %p1213_p4 = pneg %p1212_p9 }
  0x67   : > { %p1218_p3 = pnand %p1216_p1, %p1213_p4 }
  0x69   : > { %1221 = shalt.err (!%p1218_p3)
}
  0x6a   : > { %s1222_s15 = scalar_lea.vmem %s291_s18, 16  ;;  %s1229_s12 = scalar_lea.vmem %s291_s18, 32 }
  0x6b   : > { %p1223_p10 = scmp.ne.s32.totalorder %s291_s18, %s1222_s15  ;;  %p1230_p13 = scmp.lt.s32.totalorder %s291_s18, %s291_s18 }
  0x6c   : > { %p1231_p0 = scmp.lt.s32.totalorder %s1229_s12, %s1222_s15 }
  0x6d   : > { %p1225_p11 = pnand %p1223_p10, %p1544_p8 }
  0x6e   : > { %p1232_p2 = por %p1231_p0, %p1230_p13 }
  0x6f   : > { %p1226_p12 = pneg %p1225_p11 }
  0x71   : > { %p1233_p5 = pnand %p1232_p2, %p1226_p12 }
  0x73   : > { %1236 = shalt.err (!%p1233_p5)
}
  0x74   : > { %1021 = dma.hbm_to_vmem [thread:$0]  (!%p1528_p6), %s1890_s4, 16, %s291_s18, [#allocation9]  }
  0x75   : > { %s1896_s21 = sadd.s32 4294967294, %s1417_s29   ;;  %s41_s17 = sadd.s32 1, %s1413_s28 }
  0x76   : > { %p43_p8 = scmp.ge.s32.totalorder %s41_s17, 2  ;;  %s50_s13 = sadd.s32 1, %s1405_s26 }
  0x77   : > { %p57_p7 = scmp.ne.s32.totalorder %s1405_s26, %s1401_s25  ;;  %p58_p9 = scmp.eq.s32.totalorder %s1417_s29, 0 }
  0x78   : > { %s1930_s17 = smov (%p43_p8, %s41_s17), 0  ;;  %p63_p1 = scmp.ne.s32.totalorder %s1401_s25, %s1397_s24 }
  0x79   : > { %p1628_p4 = por %p58_p9, %p57_p7  ;;  %s45_s18 = ssub.s32 %s1413_s28, %s1930_s17 }
  0x7a   : > { %p173_p6 = scmp.eq.s32.totalorder %s1514_s30, 1  ;;  %p48_p3 = scmp.eq.s32.totalorder %s45_s18, 0 }
  0x7b   : > { %p1908_p10 = scmp.eq.s32.totalorder %s1514_s30, 0  ;;  %p179_p13 = scmp.eq.s32.totalorder %s1896_s21, 1 }
  0x7c   : > { %p1643_p12 = por %p173_p6, %p57_p7  ;;  %p1040_p2 = scmp.lt.s32.totalorder %s1417_s29, 2 }
  0x7d   : > { %p1639_p11 = por %p1908_p10, %p63_p1  ;;  %p1652_p0 = por %p179_p13, %p63_p1 }
  0x7e   : > { %s1910_s22 = scalar_select %p1643_p12, 1, 0 }
  0x7f   : > { %s1650_s23 = scalar_select %p48_p3, %s1405_s26, %s50_s13  }
  0x80   : > { %s1911_s9 = scalar_select %p1652_p0, 1, 0 }
  0x81   : > { %s301_s10 = sand.u32 1, %s1405_s26   ;;  %s933_s16 = sshll.u32 %s1413_s28, 6 }
  0x82   : > { %s932_s15 = sshll.u32 %s301_s10, 2  ;;  %s1662_s14 = scalar_lea.hbm %s1886_s0, %s933_s16 }
  0x83   : > { %s305_s18 = scalar_lea.vmem [#allocation2], %s932_s15  ;;  %p1666_p5 = pnand %p1040_p2, %p1628_p4 }
  0x84   : > { %s313_s13 = sshll.u32 %s305_s18, 4  ;;  %s302_s1 = scalar_lea.sflag [#allocation3], %s301_s10  ;;  %s1670_s13 = int_to_ptr.vmem [resolvable:$true] %s313_s13 }
  0x85   : > { %s1237_s2 = scalar_lea.hbm %s1662_s14, 64  ;;  %p1239_p7 = pneg %p1666_p5 }
  0x86   : > { %p1238_p8 = scmp.ne.s32.totalorder %s1662_s14, %s1237_s2  ;;  %s1242_s19 = scalar_lea.hbm %s1886_s0, 128 }
  0x87   : > { %p1243_p4 = scmp.lt.u32.totalorder %s1662_s14, %s1886_s0  ;;  %p1244_p6 = scmp.lt.u32.totalorder %s1242_s19, %s1237_s2 }
  0x88   : > { %p1240_p9 = pnand %p1239_p7, %p1238_p8  ;;  %p1246_p10 = scmp.lt.u32.totalorder %s1237_s2, %s1662_s14 }
  0x89   : > { %p1245_p3 = por %p1244_p6, %p1243_p4 }
  0x8a   : > { %p1241_p1 = pneg %p1240_p9 }
  0x8b   : > { %p1247_p13 = por %p1246_p10, %p1245_p3 }
  0x8d   : > { %p1248_p2 = pnand %p1247_p13, %p1241_p1 }
  0x8f   : > { %1251 = shalt.err (!%p1248_p2)
}
  0x90   : > { %s1252_s10 = scalar_lea.vmem %s1670_s13, 64  ;;  %s1425_s18 = smov [#allocation2]  }
  0x91   : > { %p1253_p8 = scmp.ne.s32.totalorder %s1670_s13, %s1252_s10  ;;  %s1257_s16 = sshll.u32 %s1425_s18, 4  ;;  %s1258_s16 = int_to_ptr.vmem [resolvable:$false] %s1257_s16 }
  0x92   : > { %s1259_s15 = scalar_lea.vmem %s1258_s16, 128  ;;  %p1260_p12 = scmp.lt.s32.totalorder %s1670_s13, %s1258_s16 }
  0x93   : > { %p1255_p9 = pnand %p1253_p8, %p1239_p7  ;;  %p1261_p4 = scmp.lt.s32.totalorder %s1259_s15, %s1252_s10 }
  0x95   : > { %p1256_p0 = pneg %p1255_p9  ;;  %p1262_p6 = por %p1261_p4, %p1260_p12 }
  0x97   : > { %p1263_p3 = pnand %p1262_p6, %p1256_p0 }
  0x99   : > { %1266 = shalt.err (!%p1263_p3)
}
  0x9a   : > { %1025 = dma.hbm_to_vmem [thread:$0]  (!%p1666_p5), %s1662_s14, 64, %s1670_s13, %s302_s1  }
  0x9b   : > { %p1913_p1 = scmp.ne.s32.totalorder %s1902_s8, 0 }
  0x9c   : > { %s1700_s2 = sand.u32 (!%p1913_p1), 1, %s1401_s25  }
  0x9d   : > { %322 = sbr.rel (%p1913_p1) target bundleno = 1020 (0x3fc), region = 40  ;;  %s935_s19 = sshll.u32 (!%p1913_p1), %s1700_s2, 2 }
  0x9e   : > { %s325_s12 = scalar_lea.sflag (!%p1913_p1), [#allocation3], %s1700_s2  ;;  %s328_s11 = scalar_lea.vmem (!%p1913_p1), [#allocation2], %s935_s19 }
  0xa4   : > { %1376 = dma.done.wait (%p1639_p11), %s325_s12, 64  }
  0xa5   : > { %1378 = vsyncadd (%p1639_p11), %s325_s12, 4294967232  ;;  %p1914_p12 = scmp.eq.s32.totalorder %s1514_s30, 0 }
  0xa7   : > { %1380 = dma.done.wait (%p1914_p12), [#allocation6], 32   ;;  %p1915_p0 = pmov %p1914_p12 }
  0xa9   : > { %1382 = vsyncadd (%p1915_p0), [#allocation6], 4294967264  ;;  %p1916_p5 = pmov %p1915_p0 }
  0xaa   : > { %p1917_p7 = pmov %p1915_p0 }
  0xab   : > { %1384 = dma.done.wait (%p1916_p5), [#allocation9], 272  }
  0xac   : > { %1386 = vsyncadd (%p1917_p7), [#allocation9], 4294967024  ;;  %vm390_vm0 = vcmask 261120   ;;  %v386_v0 = vld [vmem:[%s328_s11] sm:$0xf]  ;;  %v1121_v8 = vld [vmem:[#allocation8] sm:$0xff]  }
  0xad   : > { %v387_v1 = vunpack.c.l.bf16 %v386_v0  ;;  %v1426_v9 = vmov 0.0   ;;  %vm1427_vm1 = vmmov 0   ;;  %v1122_v10 = vld [vmem:[#allocation8 + $0x8] sm:$0xff]   ;;  %v943_v15 = vld [vmem:[#allocation5] ss:$0 sm:$0xff]  ;;  %s1720_s1 = sshll.u32 %s1700_s2, 4 }
  0xae   : > { %977 = vmatprep.subr.bf16.mxu0 %v1426_v9  ;;  %981 = vmatprep.mubr.msk.bf16.mxu0 %vm1427_vm1, %v1426_v9  ;;  %v944_v17 = vld [vmem:[#allocation7] ss:$0 sm:$0xff]  ;;  %v945_v21 = vld [vmem:[#allocation10] ss:$0 sm:$0xff]  ;;  %vm487_vm2 = vcmask 60416   ;;  %s1428_s8 = smov 88  }
  0xaf   : > { %v391_v2 = vsel %vm390_vm0, %v387_v1, 0.0  ;;  %978 = vmatpush3.bf16.msra.mxu0 %v1121_v8  ;;  %s1429_s21 = smov 96   ;;  %s1723_s20 = scalar_lea.vmem [#allocation11], %s1720_s1 }
  0xb0   : > { %392 = vadd.xlane.f32.xlu0 %v391_v2  ;;  %979 = vmatprep.subr.bf16.mxu0 %v1426_v9  ;;  %s1430_s14 = smov 80   ;;  %s1431_s13 = smov 72  }
  0xb1   : > { %s1432_s10 = smov 56   ;;  %s1898_s18 = smov 64  }
  0xb2   : > { %s1434_s16 = smov 112   ;;  %s1435_s15 = smov 120  }
  0xb3   : > { %980 = vmatpush3.bf16.msra.mxu0 %v1122_v10  ;;  %s1729_s19 = scalar_lea.vmem [#allocation14], %s1720_s1  ;;  %s1436_s12 = smov 48  }
  0xb4   : > { %s1437_s11 = smov 104   ;;  %p1918_p10 = scmp.ne.s32.totalorder %s1910_s22, 0 }
 0x13d   : > { %v393_v3 = vpop.xlane.xlu0 %392 }
 0x13e   : > { %v395_v4 = vmul.f32 0.03125, %v393_v3 }
 0x140   : > { %v396_v5 = vsub.f32 %v387_v1, %v395_v4 }
 0x142   : > { %v397_v6 = vmul.f32 %v396_v5, %v396_v5 }
 0x144   : > { %v398_v7 = vsel %vm390_vm0, %v397_v6, 0.0 }
 0x145   : > { %399 = vadd.xlane.f32.xlu0 %v398_v7 }
 0x1d2   : > { %v400_v11 = vpop.xlane.xlu0 %399 }
 0x1d3   : > { %v401_v12 = vmul.f32 0.03125, %v400_v11 }
 0x1d5   : > { %v402_v13 = vadd.f32 1e-05, %v401_v12 }
 0x1d7   : > { %1123 = vrsqrt.f32 %v402_v13 }
 0x1e1   : > { %v1124_v14 = vpop.eup %1123 }
 0x1e2   : > { %v404_v16 = vmul.f32 %v1124_v14, %v396_v5 }
 0x1e4   : > { %v411_v18 = vmul.f32 %v943_v15, %v404_v16 }
 0x1e6   : > { %v418_v19 = vadd.f32 %v944_v17, %v411_v18 }
 0x1e8   : > { %v419_v20 = vpack.c.bf16 %v418_v19, %v418_v19 }
 0x1ea   : > { %982 = vmatmul.mubr.msk.bf16.vlgmr.msra.gmra.mrb[0].mxu0 %vm390_vm0, %v419_v20 }
 0x2bd   : > { %v480_v22 = vpop.f32.mrb[0].mxu0 }
 0x2be   : > { %v481_v23 = vadd.f32 %v945_v21, %v480_v22  ;;  %v983_v24 = vpop.f32.mrb[1].mxu0 }
 0x2bf   : > { %v483_v25 = vpop.f32.mrb[2].mxu0 }
 0x2c0   : > { %v486_v26 = vpack.c.bf16 %v481_v23, %v481_v23  ;;  %539 = vrot.lane.b32.xlu0 %v481_v23, %s1428_s8  ;;  %490 = vrot.lane.b32.xlu1 %v481_v23, %s1429_s21  ;;  %v984_v27 = vpop.f32.mrb[3].mxu0  ;;  %s1438_s8 = smov 40   ;;  %s377_s21 = scalar_lea.vmem [#allocation12], %s1720_s1 }
 0x2c2   : > { %488 = vst.msk [vmem:[%s1723_s20] sm:$0xf] %vm487_vm2, %v486_v26 }
 0x2c4   : > { %587 = vrot.lane.b32.xlu0 %v481_v23, %s1430_s14  ;;  %635 = vrot.lane.b32.xlu1 %v481_v23, %s1431_s13  ;;  %s720_s14 = sshll.u32 %s377_s21, 4  ;;  %s683_s13 = sand.u32 1, %s1514_s30   ;;  %s1746_s14 = int_to_ptr.vmem [resolvable:$true] %s720_s14 }
 0x2c5   : > { %s1267_s30 = scalar_lea.vmem %s1746_s14, 256 }
 0x2c6   : > { %p1268_p11 = scmp.ne.s32.totalorder %s1746_s14, %s1267_s30 }
 0x2c8   : > { %577 = vrot.lane.b32.xlu1 %v486_v26, %s1432_s10  ;;  %530 = vrot.lane.b32.xlu0 %v486_v26, %s1898_s18  ;;  %s1744_s10 = sshll.u32 %s1409_s27, 8  ;;  %s1756_s27 = scalar_lea.sflag [#allocation13], %s683_s13 }
 0x2c9   : > { %p1269_p13 = pnand %p1268_p11, %p1918_p10 }
 0x2cb   : > { %p1270_p2 = pneg %p1269_p13 }
 0x2cc   : > { %582 = vrot.lane.b32.xlu1 %v486_v26, %s1434_s16  ;;  %534 = vrot.lane.b32.xlu0 %v486_v26, %s1435_s15  ;;  %s1752_s15 = scalar_lea.hbm %s1892_s6, %s1744_s10 }
 0x332   : > { %v540_v28 = vpop.permute.xlu0 %539  ;;  %v491_v29 = vpop.permute.xlu1 %490 }
 0x333   : > { %493 = vxpose.xlu1.b32.start.end [1/1] (short) (narrow) %v491_v29, 8  ;;  %542 = vxpose.xlu0.b32.start.end [1/1] (short) (narrow) %v540_v28, 8 }
 0x336   : > { %v588_v30 = vpop.permute.xlu0 %587  ;;  %v636_v31 = vpop.permute.xlu1 %635 }
 0x337   : > { %v1114_v32 = vpack.i.bf16 %v636_v31, %v588_v30 }
 0x339   : > { %1115 = vxpose.xlu1.b32.start.end [1/1] (short) (narrow) %v1114_v32, 8 }
 0x33a   : > { %v578_v33 = vpop.permute.xlu1 %577  ;;  %v531_v34 = vpop.permute.xlu0 %530 }
 0x33b   : > { %952 = vst.msk [vmem:[%s1729_s19 + $0x4] sm:$0xf] %vm487_vm2, %v578_v33  ;;  %533 = vst.msk [vmem:[%s1729_s19] sm:$0xf] %vm487_vm2, %v531_v34 }
 0x33e   : > { %v583_v35 = vpop.permute.xlu1 %582  ;;  %v535_v36 = vpop.permute.xlu0 %534 }
 0x33f   : > { %953 = vst.msk [vmem:[%s1723_s20 + $0x8] sm:$0xf] %vm487_vm2, %v583_v35  ;;  %950 = vst.msk [vmem:[%s1723_s20 + $0x4] sm:$0xf] %vm487_vm2, %v535_v36 }
 0x35c   : > { %625 = vrot.lane.b32.xlu0 %v486_v26, %s1436_s12  ;;  %s1439_s12 = smov [#allocation12]  }
 0x360   : > { %630 = vrot.lane.b32.xlu0 %v486_v26, %s1437_s11  ;;  %s1271_s11 = sshll.u32 %s1439_s12, 4  ;;  %s1272_s11 = int_to_ptr.vmem [resolvable:$false] %s1271_s11 }
 0x361   : > { %p1274_p8 = scmp.lt.s32.totalorder %s1746_s14, %s1272_s11 }
 0x364   : > { %673 = vrot.lane.b32.xlu0 %v486_v26, %s1438_s8  ;;  %s1273_s8 = scalar_lea.vmem %s1272_s11, 512 }
 0x365   : > { %p1275_p9 = scmp.lt.s32.totalorder %s1273_s8, %s1267_s30 }
 0x367   : > { %p1276_p4 = por %p1275_p9, %p1274_p8 }
 0x369   : > { %p1277_p6 = pnand %p1276_p4, %p1270_p2 }
 0x3b3   : > { %v558_v37 = vpop.trf.xlu0  ;;  %v509_v38 = vpop.trf.xlu1 }
 0x3b4   : > { %v574_v39 = vpack.c.bf16 %v558_v37, %v558_v37  ;;  %v525_v40 = vpack.c.bf16 %v509_v38, %v509_v38 }
 0x3b6   : > { %951 = vst.msk [vmem:[%s377_s21 + $0x4] sm:$0xf] %vm487_vm2, %v574_v39  ;;  %526 = vst.msk [vmem:[%s377_s21] sm:$0xf] %vm487_vm2, %v525_v40 }
 0x3b9   : > { %v1116_v41 = vpop.trf.xlu1 }
 0x3ba   : > { %v1120_v42 = vunpack.i.h.bf16 %v1116_v41  ;;  %v1117_v43 = vunpack.i.l.bf16 %v1116_v41 }
 0x3bc   : > { %v670_v44 = vpack.c.bf16 %v1120_v42, %v1120_v42  ;;  %v622_v45 = vpack.c.bf16 %v1117_v43, %v1117_v43 }
 0x3be   : > { %957 = vst.msk [vmem:[%s377_s21 + $0xc] sm:$0xf] %vm487_vm2, %v670_v44  ;;  %954 = vst.msk [vmem:[%s377_s21 + $0x8] sm:$0xf] %vm487_vm2, %v622_v45 }
 0x3bf   : > { %1280 = shalt.err (!%p1277_p6)
}
 0x3c0   : > { %s1281_s21 = scalar_lea.hbm %s1752_s15, 256  ;;  %s1285_s16 = scalar_lea.hbm %s1892_s6, 512 }
 0x3c1   : > { %p1282_p3 = scmp.ne.s32.totalorder %s1752_s15, %s1281_s21  ;;  %p1286_p0 = scmp.lt.u32.totalorder %s1752_s15, %s1892_s6 }
 0x3c2   : > { %p1287_p5 = scmp.lt.u32.totalorder %s1285_s16, %s1281_s21  ;;  %p1289_p11 = scmp.lt.u32.totalorder %s1281_s21, %s1752_s15 }
 0x3c3   : > { %p1283_p1 = pnand %p1282_p3, %p1918_p10 }
 0x3c4   : > { %p1288_p7 = por %p1287_p5, %p1286_p0 }
 0x3c5   : > { %p1284_p12 = pneg %p1283_p1 }
 0x3c6   : > { %p1290_p13 = por %p1289_p11, %p1288_p7 }
 0x3c8   : > { %p1291_p2 = pnand %p1290_p13, %p1284_p12 }
 0x3ca   : > { %1294 = shalt.err (!%p1291_p2)
}
 0x3cb   : > { %s1440_s30 = smov 4   ;;  %s703_s8 = sshll.u32 %s1723_s20, 4  ;;  %s1786_s8 = int_to_ptr.vmem [resolvable:$true] %s703_s8 }
 0x3cc   : > { %1004 = dma.vmem_to_hbm [thread:$0]  (%p1918_p10), %s1746_s14, 256, %s1752_s15, %s1756_s27, %s1898_s18, %s1898_s18, %s1440_s30  }
 0x3cd   : > { %s1792_s1 = scalar_lea.hbm %s1891_s5, %s1744_s10  ;;  %s679_s12 = scalar_lea.sflag [#allocation4], %s1700_s2 }
 0x3ce   : > { %v626_v46 = vpop.permute.xlu0 %625  ;;  %s1295_s14 = scalar_lea.vmem %s1786_s8, 256  ;;  %s1441_s15 = smov [#allocation11]  }
 0x3cf   : > { %955 = vst.msk [vmem:[%s1729_s19 + $0x8] sm:$0xf] %vm487_vm2, %v626_v46  ;;  %p1296_p8 = scmp.ne.s32.totalorder %s1786_s8, %s1295_s14  ;;  %s1299_s11 = sshll.u32 %s1441_s15, 4  ;;  %s1300_s11 = int_to_ptr.vmem [resolvable:$false] %s1299_s11 }
 0x3d0   : > { %s1301_s18 = scalar_lea.vmem %s1300_s11, 512  ;;  %p1302_p6 = scmp.lt.s32.totalorder %s1786_s8, %s1300_s11 }
 0x3d1   : > { %p1297_p9 = pnand %p1296_p8, %p1918_p10  ;;  %p1303_p3 = scmp.lt.s32.totalorder %s1301_s18, %s1295_s14 }
 0x3d2   : > { %v631_v47 = vpop.permute.xlu0 %630 }
 0x3d3   : > { %956 = vst.msk [vmem:[%s1723_s20 + $0xc] sm:$0xf] %vm487_vm2, %v631_v47  ;;  %p1298_p4 = pneg %p1297_p9  ;;  %p1304_p1 = por %p1303_p3, %p1302_p6 }
 0x3d5   : > { %p1305_p12 = pnand %p1304_p1, %p1298_p4 }
 0x3d7   : > { %1308 = shalt.err (!%p1305_p12)
}
 0x3d8   : > { %s1309_s20 = scalar_lea.hbm %s1792_s1, 256  ;;  %s1313_s15 = scalar_lea.hbm %s1891_s5, 512 }
 0x3d9   : > { %p1310_p0 = scmp.ne.s32.totalorder %s1792_s1, %s1309_s20  ;;  %p1314_p11 = scmp.lt.u32.totalorder %s1792_s1, %s1891_s5 }
 0x3da   : > { %p1315_p13 = scmp.lt.u32.totalorder %s1313_s15, %s1309_s20  ;;  %p1317_p8 = scmp.lt.u32.totalorder %s1309_s20, %s1792_s1 }
 0x3db   : > { %p1311_p5 = pnand %p1310_p0, %p1918_p10 }
 0x3dc   : > { %p1316_p2 = por %p1315_p13, %p1314_p11 }
 0x3dd   : > { %p1312_p7 = pneg %p1311_p5 }
 0x3de   : > { %p1318_p9 = por %p1317_p8, %p1316_p2 }
 0x3e0   : > { %p1319_p4 = pnand %p1318_p9, %p1312_p7 }
 0x3e2   : > { %1322 = shalt.err (!%p1319_p4)
}
 0x3e3   : > { %s1919_s18 = smov 64   ;;  %s1920_s16 = sshll.u32 %s1729_s19, 4  ;;  %v674_v48 = vpop.permute.xlu0 %673  ;;  %s1826_s16 = int_to_ptr.vmem [resolvable:$true] %s1920_s16 }
 0x3e4   : > { %1003 = dma.vmem_to_hbm [thread:$0]  (%p1918_p10), %s1786_s8, 256, %s1792_s1, %s679_s12, %s1919_s18, %s1919_s18, %s1440_s30  }
 0x3e5   : > { %s1832_s21 = scalar_lea.hbm %s1893_s7, %s1744_s10  ;;  %958 = vst.msk [vmem:[%s1729_s19 + $0xc] sm:$0xf] %vm487_vm2, %v674_v48  ;;  %s1323_s2 = scalar_lea.vmem %s1826_s16, 256 }
 0x3e6   : > { %p1324_p6 = scmp.ne.s32.totalorder %s1826_s16, %s1323_s2  ;;  %s1442_s8 = smov [#allocation14]  }
 0x3e7   : > { %s1327_s1 = sshll.u32 %s1442_s8, 4  ;;  %s1328_s1 = int_to_ptr.vmem [resolvable:$false] %s1327_s1 }
 0x3e8   : > { %p1325_p3 = pnand %p1324_p6, %p1918_p10  ;;  %s1329_s12 = scalar_lea.vmem %s1328_s1, 512 }
 0x3e9   : > { %p1330_p12 = scmp.lt.s32.totalorder %s1826_s16, %s1328_s1  ;;  %p1331_p0 = scmp.lt.s32.totalorder %s1329_s12, %s1323_s2 }
 0x3ea   : > { %p1326_p1 = pneg %p1325_p3 }
 0x3eb   : > { %p1332_p5 = por %p1331_p0, %p1330_p12 }
 0x3ed   : > { %p1333_p7 = pnand %p1332_p5, %p1326_p1 }
 0x3ef   : > { %1336 = shalt.err (!%p1333_p7)
}
 0x3f0   : > { %s1337_s19 = scalar_lea.hbm %s1832_s21, 256  ;;  %s1341_s15 = scalar_lea.hbm %s1893_s7, 512 }
 0x3f1   : > { %p1338_p11 = scmp.ne.s32.totalorder %s1832_s21, %s1337_s19  ;;  %p1342_p8 = scmp.lt.u32.totalorder %s1832_s21, %s1893_s7 }
 0x3f2   : > { %p1343_p9 = scmp.lt.u32.totalorder %s1341_s15, %s1337_s19  ;;  %p1345_p6 = scmp.lt.u32.totalorder %s1337_s19, %s1832_s21 }
 0x3f3   : > { %p1339_p13 = pnand %p1338_p11, %p1918_p10 }
 0x3f4   : > { %p1344_p4 = por %p1343_p9, %p1342_p8 }
 0x3f5   : > { %p1340_p2 = pneg %p1339_p13 }
 0x3f6   : > { %p1346_p3 = por %p1345_p6, %p1344_p4 }
 0x3f8   : > { %p1347_p1 = pnand %p1346_p3, %p1340_p2 }
 0x3fa   : > { %1350 = shalt.err (!%p1347_p1)
}
 0x3fb   : > { %1005 = dma.vmem_to_hbm [thread:$0]  (%p1918_p10), %s1826_s16, 256, %s1832_s21, %s1756_s27, %s1919_s18, %s1919_s18, %s1440_s30  }
 0x3fc PF: > { %s752_s20 = sand.u32 1, %s1397_s24   ;;  %p1921_p12 = scmp.ne.s32.totalorder %s1911_s9, 0 }
 0x3fd   : > { %p1922_p0 = scmp.ge.s32.totalorder %s1417_s29, 2  ;;  %s753_s2 = scalar_lea.sflag [#allocation4], %s752_s20 }
 0x3ff   : > { %p1027_p5 = pnand %p1922_p0, %p1921_p12 }
 0x401   : > { %1388 = dma.done.wait (!%p1027_p5), %s753_s2, 256  }
 0x402   : > { %1390 = vsyncadd (!%p1027_p5), %s753_s2, 4294967040  ;;  %s1923_s22 = sadd.s32 4294967294, %s1417_s29  }
 0x403   : > { %s761_s8 = sand.u32 1, %s1923_s22  }
 0x404   : > { %s762_s1 = scalar_lea.sflag [#allocation13], %s761_s8 }
 0x405   : > { %1392 = dma.done.wait (!%p1027_p5), %s762_s1, 512  }
 0x406   : > { %1394 = vsyncadd (!%p1027_p5), %s762_s1, 4294966784  ;;  %s29_s29 = sadd.s32 1, %s1417_s29   ;;  %s1924_s24 = smov %s1401_s25 }
 0x407   : > { %p26_p10 = scmp.ge.s32.totalorder %s29_s29, 4   ;;  %s1925_s25 = smov %s1405_s26 }
 0x408   : > { %s1926_s26 = smov %s1650_s23  ;;  %s1927_s27 = smov %s1413_s28 }
 0x409   : > { %s1928_s28 = smov %s1930_s17  ;;  %28 = sbr.rel (!%p26_p10) target bundleno = 13 (0xd), region = 142 }
 0x410   :  { %776 = vsyncpa [#allocation3], 1 }
 0x411   :  { %778 = vsyncpa [#allocation3 + $0x1], 1 }
 0x412   :  { %779 = vsyncpa [#allocation6], 1 }
 0x413   :  { %780 = vsyncpa [#allocation9], 1 }
 0x414   :  { %781 = vsyncpa [#allocation4], 1 }
 0x415   :  { %783 = vsyncpa [#allocation4 + $0x1], 1 }
 0x416   :  { %784 = vsyncpa [#allocation13], 1 }
 0x417   :  { %786 = vsyncpa [#allocation13 + $0x1], 1 }

</bundles_post_ra>
